<compile_context>
chip_gen: v7x
topology: tpu7x:2x2x1
jax: 0.10.0
libtpu: 0.0.40
codegen_flags: <defaults>
</compile_context>

<pallas_src>
import functools
import math

import jax
import jax.numpy as jnp
from jax.experimental import pallas as pl
from jax.experimental.pallas import tpu as pltpu

# ----------------------------- model hyper-params (small, synthetic) -----------------------------
B = 2            # batch
IMG = 16         # input resolution  (clip_imsize == cfg_imsize)
PATCH = 8        # vision patch size
N_PATCH = (IMG // PATCH) ** 2          # 4 patches
D_V = 32         # vision width
HEADS_V = 4
D_T = 32         # text width (ctx_dim)
HEADS_T = 4
EMB = 32         # joint embedding dim (proj / text_projection output)
LAYERS = 3       # transformer.resblocks (shared count for vision & text here)
LAYER_P = 2      # cfg.TRAINER.META.LAYERS   (prompt-injection depth)
N_CTX = 4        # cfg.TRAINER.META.N_CTX    (text context tokens)
N_PRO = 2        # cfg.TRAINER.META.N_PRO    (vision prompt tokens)
N_CLS = 3        # number of classnames
SEQ = 8          # text context length (1 + N_CTX + suffix)
EOT_POS = 6      # position of the EOT token in tokenized prompts

_BLOCK_KEYS = ("ln1_w", "ln1_b", "w_qkv", "b_qkv", "w_o", "b_o",
               "ln2_w", "ln2_b", "w_fc", "b_fc", "w_out", "b_out")


# ----------------------------- fused per-tower Pallas kernel -----------------------------
def _tower_kernel(*refs, n_heads, causal, layer_p, inject, inject_at_tail):
    """One grid step == one CLIP ResidualAttentionBlock.

    Activation is resident in `act_ref` (VMEM scratch) across the whole layer
    grid.  On the last layer the final LayerNorm + token select + projection are
    applied and the (B, EMB) result is written to `out_ref`.
    """
    if inject:
        (x_ref, sel_ref, ctx_ref,
         ln1w, ln1b, wqkv, bqkv, wo, bo,
         ln2w, ln2b, wfc, bfc, wout, bout,
         lnfw, lnfb, proj_ref, out_ref, act_ref) = refs
    else:
        (x_ref, sel_ref,
         ln1w, ln1b, wqkv, bqkv, wo, bo,
         ln2w, ln2b, wfc, bfc, wout, bout,
         lnfw, lnfb, proj_ref, out_ref, act_ref) = refs
        ctx_ref = None

    layer = pl.program_id(0)
    n_layers = pl.num_programs(0)
    Bn, S, D = act_ref.shape
    h = D // n_heads
    scale = 1.0 / math.sqrt(h)

    @pl.when(layer == 0)
    def _():
        act_ref[...] = x_ref[...]

    if inject:
        # deep prompt injection: overwrite the prompt rows in VMEM before the block
        @pl.when(jnp.logical_and(layer >= 1, layer < layer_p))
        def _():
            ctx = ctx_ref[:, 0]                    # (Bn, n_inj, D) for this layer
            n_inj = ctx_ref.shape[2]
            cur = act_ref[...]
            if inject_at_tail:                     # vision: replace trailing prompt rows
                new = jnp.concatenate([cur[:, :S - n_inj, :], ctx], axis=1)
            else:                                  # text: replace rows [1, 1+n_ctx)
                new = jnp.concatenate([cur[:, :1, :], ctx, cur[:, 1 + n_inj:, :]], axis=1)
            act_ref[...] = new

    def layer_norm(v, w_ref, b_ref):
        mu = jnp.mean(v, axis=-1, keepdims=True)
        var = jnp.mean(jnp.square(v - mu), axis=-1, keepdims=True)
        return (v - mu) * jax.lax.rsqrt(var + 1e-5) * w_ref[0] + b_ref[0]

    def bmm(a, w_ref, b_ref):
        # a: (Bn, S, K) ; w_ref block: (1, K, N) ; b_ref block: (1, 1, N)
        w = jnp.broadcast_to(w_ref[...], (Bn,) + tuple(w_ref.shape[1:]))
        return jnp.einsum("bsk,bkn->bsn", a, w,
                          preferred_element_type=jnp.float32) + b_ref[0]

    x = act_ref[...]                               # (Bn, S, D)

    # ---- multi-head self-attention (fused QKV projection) ----
    y = layer_norm(x, ln1w, ln1b)
    qkv = bmm(y, wqkv, bqkv)                       # (Bn, S, 3D)
    q, k, v = qkv[..., :D], qkv[..., D:2 * D], qkv[..., 2 * D:]

    heads = []
    for hd in range(n_heads):                      # static unroll over heads
        sl = slice(hd * h, (hd + 1) * h)
        qh, kh, vh = q[..., sl], k[..., sl], v[..., sl]     # (Bn, S, h)
        s = jnp.einsum("bqc,bkc->bqk", qh, kh,
                       preferred_element_type=jnp.float32) * scale
        if causal:
            row = jax.lax.broadcasted_iota(jnp.int32, (S, S), 0)
            col = jax.lax.broadcasted_iota(jnp.int32, (S, S), 1)
            s = jnp.where((col <= row)[None], s, jnp.float32(-1e30))
        s = s - jnp.max(s, axis=-1, keepdims=True)
        p = jnp.exp(s)
        p = p / jnp.sum(p, axis=-1, keepdims=True)
        heads.append(jnp.einsum("bqk,bkc->bqc", p, vh,
                                preferred_element_type=jnp.float32))
    o = jnp.concatenate(heads, axis=-1)            # (Bn, S, D)
    x = x + bmm(o, wo, bo)

    # ---- MLP with QuickGELU ----
    y = layer_norm(x, ln2w, ln2b)
    hdn = bmm(y, wfc, bfc)
    hdn = hdn * jax.nn.sigmoid(1.702 * hdn)
    x = x + bmm(hdn, wout, bout)

    act_ref[...] = x

    # ---- last layer: final LN + CLS/EOT token select + projection ----
    @pl.when(layer == n_layers - 1)
    def _():
        feats = jnp.sum(sel_ref[...] * x, axis=1)  # (Bn, D)  one-hot token select
        feats = layer_norm(feats, lnfw, lnfb)
        out_ref[...] = jnp.dot(feats, proj_ref[...],
                               preferred_element_type=jnp.float32)


def run_tower(x, sel, blocks, lnf_w, lnf_b, proj, *, n_heads, causal,
              ctx=None, inject_at_tail=False, layer_p=LAYER_P):
    """One pallas_call per transformer tower pass (grid over layers)."""
    Bn, S, D = x.shape
    n_layers = blocks["w_qkv"].shape[0]
    E = proj.shape[1]
    inject = ctx is not None

    kern = functools.partial(_tower_kernel, n_heads=n_heads, causal=causal,
                             layer_p=layer_p, inject=inject,
                             inject_at_tail=inject_at_tail)

    def full_spec(a):
        return pl.BlockSpec(a.shape, lambda l, nd=a.ndim: (0,) * nd)

    def layer_spec(a):
        nd = a.ndim
        return pl.BlockSpec((1,) + a.shape[1:],
                            lambda l, nd=nd: (l,) + (0,) * (nd - 1))

    args = [x, sel]
    specs = [full_spec(x), full_spec(sel)]
    if inject:
        n_dep = ctx.shape[1]                       # == LAYER_P
        args.append(ctx)
        specs.append(pl.BlockSpec(
            (ctx.shape[0], 1, ctx.shape[2], ctx.shape[3]),
            lambda l, nd=n_dep: (0, jnp.minimum(l, nd - 1), 0, 0)))
    for name in _BLOCK_KEYS:                       # stacked per-layer weights
        a = blocks[name]
        args.append(a)
        specs.append(layer_spec(a))
    for a in (lnf_w, lnf_b, proj):                 # final LN + projection
        args.append(a)
        specs.append(full_spec(a))

    return pl.pallas_call(
        kern,
        out_shape=jax.ShapeDtypeStruct((Bn, E), jnp.float32),
        grid=(n_layers,),
        in_specs=specs,
        out_specs=pl.BlockSpec((Bn, E), lambda l: (0, 0)),
        scratch_shapes=[pltpu.VMEM((Bn, S, D), jnp.float32)],
        compiler_params=pltpu.CompilerParams(
            dimension_semantics=("arbitrary",)),
    )(*args)


# ----------------------------- plain-JAX glue (fused by XLA under jit) -----------------------------
def _layer_norm(x, w, b, eps=1e-5):
    mu = jnp.mean(x, axis=-1, keepdims=True)
    var = jnp.mean(jnp.square(x - mu), axis=-1, keepdims=True)
    return (x - mu) * jax.lax.rsqrt(var + eps) * w + b


def _l2norm(x, eps=1e-12):
    # eps guard: reference divides by the raw norm; guard avoids NaN on zero vectors
    return x / jnp.maximum(jnp.linalg.norm(x, axis=-1, keepdims=True), eps)


def _token_select(idx, s):
    # (N,) int32 -> (N, S, 1) one-hot selector used by the in-kernel token gather
    return jax.nn.one_hot(idx, s, dtype=jnp.float32)[:, :, None]


def embed_patches(image, P):
    # conv1 as patch-extract + matmul; patch order (gy, gx), inner order (C, ky, kx)
    b, c, H, W = image.shape
    p = PATCH
    x = image.reshape(b, c, H // p, p, W // p, p)
    x = jnp.transpose(x, (0, 2, 4, 1, 3, 5)).reshape(b, (H // p) * (W // p), c * p * p)
    feat = jnp.einsum("bnk,kd->bnd", x, P["conv1_w"])
    cls = jnp.broadcast_to(P["class_emb"][None, None, :], (b, 1, D_V))
    x = jnp.concatenate([cls, feat], axis=1)       # (B, 1+NP, D_V)
    return x + P["vis_pos"][None]


def encode_image_zs(image, P):
    """clip_model.encode_image (zero-shot branch, no prompts)."""
    x = embed_patches(image, P)
    x = _layer_norm(x, P["ln_pre_w"], P["ln_pre_b"])
    sel = _token_select(jnp.zeros((x.shape[0],), jnp.int32), x.shape[1])   # CLS @ 0
    return run_tower(x, sel, P["vis_blocks"], P["ln_post_w"], P["ln_post_b"],
                     P["vis_proj"], n_heads=HEADS_V, causal=False)


def encode_image_prompted(image, P):
    """VisionPromptLearner + VisionEncoder (deep prompt injection)."""
    x = embed_patches(image, P)
    ctx_v = jnp.broadcast_to(P["vis_ctx"][None], (x.shape[0],) + P["vis_ctx"].shape)
    x = jnp.concatenate([x, ctx_v[:, 0]], axis=1)  # (B, 1+NP+N_PRO, D_V)
    x = _layer_norm(x, P["ln_pre_w"], P["ln_pre_b"])
    sel = _token_select(jnp.zeros((x.shape[0],), jnp.int32), x.shape[1])   # CLS @ 0
    return run_tower(x, sel, P["vis_blocks"], P["ln_post_w"], P["ln_post_b"],
                     P["vis_proj"], n_heads=HEADS_V, causal=False,
                     ctx=ctx_v, inject_at_tail=True)


def encode_text(prompts, eot_idx, ctx_t, P):
    """TextEncoder; ctx_t=None gives the zero-shot clip_model.encode_text trunk."""
    x = prompts + P["text_pos"][None]
    sel = _token_select(eot_idx, prompts.shape[1])
    return run_tower(x, sel, P["text_blocks"], P["ln_final_w"], P["ln_final_b"],
                     P["text_proj"], n_heads=HEADS_T, causal=True,
                     ctx=ctx_t, inject_at_tail=False)


def prompt_learner(P):
    ctx = jnp.broadcast_to(P["text_ctx"][None], (N_CLS,) + P["text_ctx"].shape)
    prompts = jnp.concatenate([P["token_prefix"], ctx[:, 0], P["token_suffix"]], axis=1)
    return prompts, ctx


# ----------------------------- parameter init (stacked per-layer weights) -----------------------------
def init_blocks(key, d, n_layers):
    ks = jax.random.split(key, 6)

    def nrm(k, shape, std=0.02):
        return (std * jax.random.normal(k, shape)).astype(jnp.float32)

    wq = nrm(ks[0], (n_layers, d, d))
    wk = nrm(ks[1], (n_layers, d, d))
    wv = nrm(ks[2], (n_layers, d, d))
    return {
        "ln1_w": jnp.ones((n_layers, 1, d), jnp.float32),
        "ln1_b": jnp.zeros((n_layers, 1, d), jnp.float32),
        "w_qkv": jnp.concatenate([wq, wk, wv], axis=-1),      # fused QKV (d, 3d)
        "b_qkv": jnp.zeros((n_layers, 1, 3 * d), jnp.float32),
        "w_o": nrm(ks[3], (n_layers, d, d)),
        "b_o": jnp.zeros((n_layers, 1, d), jnp.float32),
        "ln2_w": jnp.ones((n_layers, 1, d), jnp.float32),
        "ln2_b": jnp.zeros((n_layers, 1, d), jnp.float32),
        "w_fc": nrm(ks[4], (n_layers, d, 4 * d)),
        "b_fc": jnp.zeros((n_layers, 1, 4 * d), jnp.float32),
        "w_out": nrm(ks[5], (n_layers, 4 * d, d)),
        "b_out": jnp.zeros((n_layers, 1, d), jnp.float32),
    }


def build_model(key):
    keys = iter(jax.random.split(key, 16))

    def nrm(shape, std=0.02):
        return (std * jax.random.normal(next(keys), shape)).astype(jnp.float32)

    P = {}
    # vision tower
    P["conv1_w"] = nrm((3 * PATCH * PATCH, D_V))
    P["class_emb"] = nrm((D_V,))
    P["vis_pos"] = nrm((1 + N_PATCH, D_V))
    P["ln_pre_w"] = jnp.ones((1, D_V), jnp.float32)
    P["ln_pre_b"] = jnp.zeros((1, D_V), jnp.float32)
    P["ln_post_w"] = jnp.ones((1, D_V), jnp.float32)
    P["ln_post_b"] = jnp.zeros((1, D_V), jnp.float32)
    P["vis_proj"] = nrm((D_V, EMB))
    P["vis_blocks"] = init_blocks(next(keys), D_V, LAYERS)
    # text tower
    P["text_pos"] = nrm((SEQ, D_T))
    P["ln_final_w"] = jnp.ones((1, D_T), jnp.float32)
    P["ln_final_b"] = jnp.zeros((1, D_T), jnp.float32)
    P["text_proj"] = nrm((D_T, EMB))
    P["text_blocks"] = init_blocks(next(keys), D_T, LAYERS)
    P["logit_scale"] = jnp.float32(math.log(1.0 / 0.07))
    # learnable prompt contexts (std=0.02 normal, as in the reference)
    P["text_ctx"] = nrm((LAYER_P, N_CTX, D_T))
    P["vis_ctx"] = nrm((LAYER_P, N_PRO, D_V))
    # TODO(synk): clip.tokenize + token_embedding lookup replaced by synthetic embeddings.
    emb = nrm((N_CLS, SEQ, D_T))
    P["token_prefix"] = emb[:, :1, :]
    P["token_suffix"] = emb[:, 1 + N_CTX:, :]
    P["tokenized_prompts"] = jnp.zeros((N_CLS, SEQ), jnp.int32).at[:, EOT_POS].set(1000)

    # zero-shot text features (one template per class), jitted so the Pallas text
    # tower + the tiny normalizations compile into one executable
    zs_emb = nrm((N_CLS, SEQ, D_T))
    zs_eot = jnp.full((N_CLS,), EOT_POS, dtype=jnp.int32)

    @jax.jit
    def _zs_text(emb_, eot_, params):
        f = encode_text(emb_, eot_, None, params)
        f = _l2norm(f)          # per-template normalize
        f = _l2norm(f)          # mean over (single) template + renormalize
        return f.T              # (EMB, N_CLS)

    P["text_features_zs"] = _zs_text(zs_emb, zs_eot, dict(P))
    return P


# ----------------------------- CustomCLIP forward (jitted) -----------------------------
@jax.jit
def custom_clip_forward(image, P):
    text_features_zs = P["text_features_zs"]                     # (EMB, N_CLS)

    image_features_zs = _l2norm(encode_image_zs(image, P))       # (B, EMB)

    image_features = encode_image_prompted(image, P)             # (B, EMB)

    prompts, ctx_t = prompt_learner(P)
    eot_idx = jnp.argmax(P["tokenized_prompts"], axis=-1)
    text_features = encode_text(prompts, eot_idx, ctx_t, P)      # (N_CLS, EMB)

    image_features = _l2norm(image_features)
    text_features = _l2norm(text_features)

    logit_scale = jnp.exp(P["logit_scale"])
    logits_i = logit_scale * (image_features @ text_features_zs)      # (B, N_CLS)
    logits_t = logit_scale * (image_features_zs @ text_features.T)    # (B, N_CLS)
    logits_ce = logit_scale * (image_features @ text_features.T)      # (B, N_CLS)

    reg_text = jnp.mean(jnp.abs(text_features - text_features_zs.T))
    reg_image = jnp.mean(jnp.abs(image_features - image_features_zs))

    def cos(a, b, eps=1e-7):
        num = jnp.sum(a * b, axis=1)
        den = jnp.maximum(jnp.linalg.norm(a, axis=1) * jnp.linalg.norm(b, axis=1), eps)
        return num / den

    score_text = 1.0 - jnp.mean(cos(text_features, text_features_zs.T))
    score_image = 1.0 - jnp.mean(cos(image_features, image_features_zs))

    # training mode, step=None -> (logits_ce, reg_image, reg_text); extras for completeness
    return logits_ce, reg_image, reg_text, logits_i, logits_t, score_image, score_text


# ----------------------------- main -----------------------------
if __name__ == "__main__":
    key = jax.random.PRNGKey(0)
    k_param, k_img = jax.random.split(key)
    P = build_model(k_param)
    image = jax.random.normal(k_img, (B, 3, IMG, IMG), dtype=jnp.float32)  # NCHW

    outs = custom_clip_forward(image, P)
    jax.block_until_ready(outs)

    logits_ce = outs[0]
    assert logits_ce.shape == (B, N_CLS)
    assert outs[3].shape == (B, N_CLS) and outs[4].shape == (B, N_CLS)
    assert all(bool(jnp.all(jnp.isfinite(o))) for o in outs)
    print("KERNEL_OK")
</pallas_src>

<mosaic_0001>
module attributes {stable_mosaic.version = 11 : i64} {
  func.func @_tower_kernel(%arg0: i32, %arg1: memref<3x8x32xf32, #tpu.memory_space<vmem>>, %arg2: memref<3x8x1xf32, #tpu.memory_space<vmem>>, %arg3: memref<1x1x32xf32, #tpu.memory_space<vmem>>, %arg4: memref<1x1x32xf32, #tpu.memory_space<vmem>>, %arg5: memref<1x32x96xf32, #tpu.memory_space<vmem>>, %arg6: memref<1x1x96xf32, #tpu.memory_space<vmem>>, %arg7: memref<1x32x32xf32, #tpu.memory_space<vmem>>, %arg8: memref<1x1x32xf32, #tpu.memory_space<vmem>>, %arg9: memref<1x1x32xf32, #tpu.memory_space<vmem>>, %arg10: memref<1x1x32xf32, #tpu.memory_space<vmem>>, %arg11: memref<1x32x128xf32, #tpu.memory_space<vmem>>, %arg12: memref<1x1x128xf32, #tpu.memory_space<vmem>>, %arg13: memref<1x128x32xf32, #tpu.memory_space<vmem>>, %arg14: memref<1x1x32xf32, #tpu.memory_space<vmem>>, %arg15: memref<1x32xf32, #tpu.memory_space<vmem>>, %arg16: memref<1x32xf32, #tpu.memory_space<vmem>>, %arg17: memref<32x32xf32, #tpu.memory_space<vmem>>, %arg18: memref<3x32xf32, #tpu.memory_space<vmem>>, %arg19: memref<3x8x32xf32, #tpu.memory_space<vmem>>) attributes {dimension_semantics = [#tpu.dimension_semantics<arbitrary>], iteration_bounds = array<i64: 3>, scalar_prefetch = 0 : i64, scratch_operands = 1 : i64, tpu.core_type = #tpu.core_type<tc>, window_params = [{pipeline_mode = #tpu.pipeline_mode<synchronous>, transform_indices = @transform_0, window_bounds = array<i64: 3, 8, 32>}, {pipeline_mode = #tpu.pipeline_mode<synchronous>, transform_indices = @transform_1, window_bounds = array<i64: 3, 8, 1>}, {transform_indices = @transform_2, window_bounds = array<i64: 1, 1, 32>}, {transform_indices = @transform_3, window_bounds = array<i64: 1, 1, 32>}, {transform_indices = @transform_4, window_bounds = array<i64: 1, 32, 96>}, {transform_indices = @transform_5, window_bounds = array<i64: 1, 1, 96>}, {transform_indices = @transform_6, window_bounds = array<i64: 1, 32, 32>}, {transform_indices = @transform_7, window_bounds = array<i64: 1, 1, 32>}, {transform_indices = @transform_8, window_bounds = array<i64: 1, 1, 32>}, {transform_indices = @transform_9, window_bounds = array<i64: 1, 1, 32>}, {transform_indices = @transform_10, window_bounds = array<i64: 1, 32, 128>}, {transform_indices = @transform_11, window_bounds = array<i64: 1, 1, 128>}, {transform_indices = @transform_12, window_bounds = array<i64: 1, 128, 32>}, {transform_indices = @transform_13, window_bounds = array<i64: 1, 1, 32>}, {pipeline_mode = #tpu.pipeline_mode<synchronous>, transform_indices = @transform_14, window_bounds = array<i64: 1, 32>}, {pipeline_mode = #tpu.pipeline_mode<synchronous>, transform_indices = @transform_15, window_bounds = array<i64: 1, 32>}, {pipeline_mode = #tpu.pipeline_mode<synchronous>, transform_indices = @transform_16, window_bounds = array<i64: 32, 32>}, {pipeline_mode = #tpu.pipeline_mode<synchronous>, transform_indices = @transform_17, window_bounds = array<i64: 3, 32>}]} {
    %c0_i32 = arith.constant 0 : i32
    %0 = arith.cmpi eq, %arg0, %c0_i32 : i32
    %1 = arith.extui %0 : i1 to i32
    %c0_i32_0 = arith.constant 0 : i32
    %2 = arith.cmpi ne, %1, %c0_i32_0 : i32
    scf.if %2 {
      %c0_82 = arith.constant 0 : index
      %c0_83 = arith.constant 0 : index
      %c0_84 = arith.constant 0 : index
      %210 = vector.load %arg1[%c0_82, %c0_83, %c0_84] : memref<3x8x32xf32, #tpu.memory_space<vmem>>, vector<3x8x32xf32>
      %c0_85 = arith.constant 0 : index
      %c0_86 = arith.constant 0 : index
      %c0_87 = arith.constant 0 : index
      %211 = vector.load %arg19[%c0_85, %c0_86, %c0_87] : memref<3x8x32xf32, #tpu.memory_space<vmem>>, vector<3x8x32xf32>
      tpu.vector_store %arg19[%c0_85, %c0_86, %c0_87], %210 {strides = array<i32>} : memref<3x8x32xf32, #tpu.memory_space<vmem>>, vector<3x8x32xf32>,
    } else {
    }
    %c0 = arith.constant 0 : index
    %c0_1 = arith.constant 0 : index
    %c0_2 = arith.constant 0 : index
    %3 = vector.load %arg19[%c0, %c0_1, %c0_2] : memref<3x8x32xf32, #tpu.memory_space<vmem>>, vector<3x8x32xf32>
    %cst = arith.constant dense<0.000000e+00> : vector<3x8xf32>
    %4 = vector.multi_reduction <add>, %3, %cst [2] : vector<3x8x32xf32> to vector<3x8xf32>
    %5 = vector.shape_cast %4 : vector<3x8xf32> to vector<3x8x1xf32>
    %cst_3 = arith.constant 3.200000e+01 : f32
    %6 = vector.broadcast %cst_3 : f32 to vector<3x8x1xf32>
    %7 = arith.divf %5, %6 : vector<3x8x1xf32>
    %8 = vector.broadcast %7 : vector<3x8x1xf32> to vector<3x8x32xf32>
    %9 = arith.subf %3, %8 : vector<3x8x32xf32>
    %10 = arith.mulf %9, %9 : vector<3x8x32xf32>
    %cst_4 = arith.constant dense<0.000000e+00> : vector<3x8xf32>
    %11 = vector.multi_reduction <add>, %10, %cst_4 [2] : vector<3x8x32xf32> to vector<3x8xf32>
    %12 = vector.shape_cast %11 : vector<3x8xf32> to vector<3x8x1xf32>
    %cst_5 = arith.constant 3.200000e+01 : f32
    %13 = vector.broadcast %cst_5 : f32 to vector<3x8x1xf32>
    %14 = arith.divf %12, %13 : vector<3x8x1xf32>
    %15 = vector.broadcast %7 : vector<3x8x1xf32> to vector<3x8x32xf32>
    %16 = arith.subf %3, %15 : vector<3x8x32xf32>
    %cst_6 = arith.constant 9.99999974E-6 : f32
    %17 = vector.broadcast %cst_6 : f32 to vector<3x8x1xf32>
    %18 = arith.addf %14, %17 : vector<3x8x1xf32>
    %19 = math.rsqrt %18 : vector<3x8x1xf32>
    %20 = vector.broadcast %19 : vector<3x8x1xf32> to vector<3x8x32xf32>
    %21 = arith.mulf %16, %20 : vector<3x8x32xf32>
    %c0_7 = arith.constant 0 : index
    %c0_8 = arith.constant 0 : index
    %c0_9 = arith.constant 0 : index
    %22 = vector.load %arg3[%c0_7, %c0_8, %c0_9] : memref<1x1x32xf32, #tpu.memory_space<vmem>>, vector<1x1x32xf32>
    %23 = vector.shape_cast %22 : vector<1x1x32xf32> to vector<1x32xf32>
    %24 = vector.shape_cast %23 : vector<1x32xf32> to vector<1x1x32xf32>
    %25 = vector.broadcast %24 : vector<1x1x32xf32> to vector<3x8x32xf32>
    %26 = arith.mulf %21, %25 : vector<3x8x32xf32>
    %c0_10 = arith.constant 0 : index
    %c0_11 = arith.constant 0 : index
    %c0_12 = arith.constant 0 : index
    %27 = vector.load %arg4[%c0_10, %c0_11, %c0_12] : memref<1x1x32xf32, #tpu.memory_space<vmem>>, vector<1x1x32xf32>
    %28 = vector.shape_cast %27 : vector<1x1x32xf32> to vector<1x32xf32>
    %29 = vector.shape_cast %28 : vector<1x32xf32> to vector<1x1x32xf32>
    %30 = vector.broadcast %29 : vector<1x1x32xf32> to vector<3x8x32xf32>
    %31 = arith.addf %26, %30 : vector<3x8x32xf32>
    %c0_13 = arith.constant 0 : index
    %c0_14 = arith.constant 0 : index
    %c0_15 = arith.constant 0 : index
    %32 = vector.load %arg5[%c0_13, %c0_14, %c0_15] : memref<1x32x96xf32, #tpu.memory_space<vmem>>, vector<1x32x96xf32>
    %33 = vector.shape_cast %32 : vector<1x32x96xf32> to vector<1x32x96xf32>
    %34 = vector.broadcast %33 : vector<1x32x96xf32> to vector<3x32x96xf32>
    "tpu.trace_start"() <{level = 10 : i32, message = "bsk,bkn->bsn"}> : () -> ()
    %cst_16 = arith.constant dense<0.000000e+00> : vector<3x8x96xf32>
    %35 = tpu.matmul %31, %34, %cst_16 {dimension_numbers = #tpu.dot_dimension_numbers<[2], [1], [1], [2], [0, 0, 0, 1, 1, 2], [0], [0]>} : vector<3x8x32xf32>, vector<3x32x96xf32>, vector<3x8x96xf32> -> vector<3x8x96xf32>
    "tpu.trace_stop"() : () -> ()
    %c0_17 = arith.constant 0 : index
    %c0_18 = arith.constant 0 : index
    %c0_19 = arith.constant 0 : index
    %36 = vector.load %arg6[%c0_17, %c0_18, %c0_19] : memref<1x1x96xf32, #tpu.memory_space<vmem>>, vector<1x1x96xf32>
    %37 = vector.shape_cast %36 : vector<1x1x96xf32> to vector<1x96xf32>
    %38 = vector.shape_cast %37 : vector<1x96xf32> to vector<1x1x96xf32>
    %39 = vector.broadcast %38 : vector<1x1x96xf32> to vector<3x8x96xf32>
    %40 = arith.addf %35, %39 : vector<3x8x96xf32>
    %41 = vector.extract_strided_slice %40 {offsets = [0, 0, 0], sizes = [3, 8, 32], strides = [1, 1, 1]} : vector<3x8x96xf32> to vector<3x8x32xf32>
    %42 = vector.extract_strided_slice %40 {offsets = [0, 0, 32], sizes = [3, 8, 32], strides = [1, 1, 1]} : vector<3x8x96xf32> to vector<3x8x32xf32>
    %43 = vector.extract_strided_slice %40 {offsets = [0, 0, 64], sizes = [3, 8, 32], strides = [1, 1, 1]} : vector<3x8x96xf32> to vector<3x8x32xf32>
    %44 = vector.extract_strided_slice %41 {offsets = [0, 0, 0], sizes = [3, 8, 8], strides = [1, 1, 1]} : vector<3x8x32xf32> to vector<3x8x8xf32>
    %45 = vector.extract_strided_slice %42 {offsets = [0, 0, 0], sizes = [3, 8, 8], strides = [1, 1, 1]} : vector<3x8x32xf32> to vector<3x8x8xf32>
    %46 = vector.extract_strided_slice %43 {offsets = [0, 0, 0], sizes = [3, 8, 8], strides = [1, 1, 1]} : vector<3x8x32xf32> to vector<3x8x8xf32>
    "tpu.trace_start"() <{level = 10 : i32, message = "bqc,bkc->bqk"}> : () -> ()
    %cst_20 = arith.constant dense<0.000000e+00> : vector<3x8x8xf32>
    %47 = tpu.matmul %44, %45, %cst_20 {dimension_numbers = #tpu.dot_dimension_numbers<[2], [2], [1], [1], [0, 0, 0, 1, 1, 1], [0], [0]>} : vector<3x8x8xf32>, vector<3x8x8xf32>, vector<3x8x8xf32> -> vector<3x8x8xf32>
    "tpu.trace_stop"() : () -> ()
    %cst_21 = arith.constant 0.353553385 : f32
    %48 = vector.broadcast %cst_21 : f32 to vector<3x8x8xf32>
    %49 = arith.mulf %47, %48 : vector<3x8x8xf32>
    %50 = tpu.iota {dimensions = array<i32: 0>} : vector<8x8xi32>
    %51 = tpu.iota {dimensions = array<i32: 1>} : vector<8x8xi32>
    %52 = arith.cmpi sle, %51, %50 : vector<8x8xi32>
    %53 = vector.shape_cast %52 : vector<8x8xi1> to vector<1x8x8xi1>
    %cst_22 = arith.constant -1.000000e+30 : f32
    %54 = vector.shape_cast %53 : vector<1x8x8xi1> to vector<1x8x8xi1>
    %55 = vector.broadcast %54 : vector<1x8x8xi1> to vector<3x8x8xi1>
    %56 = vector.broadcast %cst_22 : f32 to vector<3x8x8xf32>
    %57 = arith.select %55, %49, %56 : vector<3x8x8xi1>, vector<3x8x8xf32>
    %cst_23 = arith.constant dense<0xFF800000> : vector<3x8xf32>
    %58 = vector.multi_reduction <maximumf>, %57, %cst_23 [2] : vector<3x8x8xf32> to vector<3x8xf32>
    %59 = vector.shape_cast %58 : vector<3x8xf32> to vector<3x8x1xf32>
    %60 = vector.broadcast %59 : vector<3x8x1xf32> to vector<3x8x8xf32>
    %61 = arith.subf %57, %60 : vector<3x8x8xf32>
    %62 = math.exp %61 : vector<3x8x8xf32>
    %cst_24 = arith.constant dense<0.000000e+00> : vector<3x8xf32>
    %63 = vector.multi_reduction <add>, %62, %cst_24 [2] : vector<3x8x8xf32> to vector<3x8xf32>
    %64 = vector.shape_cast %63 : vector<3x8xf32> to vector<3x8x1xf32>
    %65 = vector.broadcast %64 : vector<3x8x1xf32> to vector<3x8x8xf32>
    %66 = arith.divf %62, %65 : vector<3x8x8xf32>
    "tpu.trace_start"() <{level = 10 : i32, message = "bqk,bkc->bqc"}> : () -> ()
    %cst_25 = arith.constant dense<0.000000e+00> : vector<3x8x8xf32>
    %67 = tpu.matmul %66, %46, %cst_25 {dimension_numbers = #tpu.dot_dimension_numbers<[2], [1], [1], [2], [0, 0, 0, 1, 1, 2], [0], [0]>} : vector<3x8x8xf32>, vector<3x8x8xf32>, vector<3x8x8xf32> -> vector<3x8x8xf32>
    "tpu.trace_stop"() : () -> ()
    %68 = vector.extract_strided_slice %41 {offsets = [0, 0, 8], sizes = [3, 8, 8], strides = [1, 1, 1]} : vector<3x8x32xf32> to vector<3x8x8xf32>
    %69 = vector.extract_strided_slice %42 {offsets = [0, 0, 8], sizes = [3, 8, 8], strides = [1, 1, 1]} : vector<3x8x32xf32> to vector<3x8x8xf32>
    %70 = vector.extract_strided_slice %43 {offsets = [0, 0, 8], sizes = [3, 8, 8], strides = [1, 1, 1]} : vector<3x8x32xf32> to vector<3x8x8xf32>
    "tpu.trace_start"() <{level = 10 : i32, message = "bqc,bkc->bqk"}> : () -> ()
    %cst_26 = arith.constant dense<0.000000e+00> : vector<3x8x8xf32>
    %71 = tpu.matmul %68, %69, %cst_26 {dimension_numbers = #tpu.dot_dimension_numbers<[2], [2], [1], [1], [0, 0, 0, 1, 1, 1], [0], [0]>} : vector<3x8x8xf32>, vector<3x8x8xf32>, vector<3x8x8xf32> -> vector<3x8x8xf32>
    "tpu.trace_stop"() : () -> ()
    %cst_27 = arith.constant 0.353553385 : f32
    %72 = vector.broadcast %cst_27 : f32 to vector<3x8x8xf32>
    %73 = arith.mulf %71, %72 : vector<3x8x8xf32>
    %74 = tpu.iota {dimensions = array<i32: 0>} : vector<8x8xi32>
    %75 = tpu.iota {dimensions = array<i32: 1>} : vector<8x8xi32>
    %76 = arith.cmpi sle, %75, %74 : vector<8x8xi32>
    %77 = vector.shape_cast %76 : vector<8x8xi1> to vector<1x8x8xi1>
    %cst_28 = arith.constant -1.000000e+30 : f32
    %78 = vector.shape_cast %77 : vector<1x8x8xi1> to vector<1x8x8xi1>
    %79 = vector.broadcast %78 : vector<1x8x8xi1> to vector<3x8x8xi1>
    %80 = vector.broadcast %cst_28 : f32 to vector<3x8x8xf32>
    %81 = arith.select %79, %73, %80 : vector<3x8x8xi1>, vector<3x8x8xf32>
    %cst_29 = arith.constant dense<0xFF800000> : vector<3x8xf32>
    %82 = vector.multi_reduction <maximumf>, %81, %cst_29 [2] : vector<3x8x8xf32> to vector<3x8xf32>
    %83 = vector.shape_cast %82 : vector<3x8xf32> to vector<3x8x1xf32>
    %84 = vector.broadcast %83 : vector<3x8x1xf32> to vector<3x8x8xf32>
    %85 = arith.subf %81, %84 : vector<3x8x8xf32>
    %86 = math.exp %85 : vector<3x8x8xf32>
    %cst_30 = arith.constant dense<0.000000e+00> : vector<3x8xf32>
    %87 = vector.multi_reduction <add>, %86, %cst_30 [2] : vector<3x8x8xf32> to vector<3x8xf32>
    %88 = vector.shape_cast %87 : vector<3x8xf32> to vector<3x8x1xf32>
    %89 = vector.broadcast %88 : vector<3x8x1xf32> to vector<3x8x8xf32>
    %90 = arith.divf %86, %89 : vector<3x8x8xf32>
    "tpu.trace_start"() <{level = 10 : i32, message = "bqk,bkc->bqc"}> : () -> ()
    %cst_31 = arith.constant dense<0.000000e+00> : vector<3x8x8xf32>
    %91 = tpu.matmul %90, %70, %cst_31 {dimension_numbers = #tpu.dot_dimension_numbers<[2], [1], [1], [2], [0, 0, 0, 1, 1, 2], [0], [0]>} : vector<3x8x8xf32>, vector<3x8x8xf32>, vector<3x8x8xf32> -> vector<3x8x8xf32>
    "tpu.trace_stop"() : () -> ()
    %92 = vector.extract_strided_slice %41 {offsets = [0, 0, 16], sizes = [3, 8, 8], strides = [1, 1, 1]} : vector<3x8x32xf32> to vector<3x8x8xf32>
    %93 = vector.extract_strided_slice %42 {offsets = [0, 0, 16], sizes = [3, 8, 8], strides = [1, 1, 1]} : vector<3x8x32xf32> to vector<3x8x8xf32>
    %94 = vector.extract_strided_slice %43 {offsets = [0, 0, 16], sizes = [3, 8, 8], strides = [1, 1, 1]} : vector<3x8x32xf32> to vector<3x8x8xf32>
    "tpu.trace_start"() <{level = 10 : i32, message = "bqc,bkc->bqk"}> : () -> ()
    %cst_32 = arith.constant dense<0.000000e+00> : vector<3x8x8xf32>
    %95 = tpu.matmul %92, %93, %cst_32 {dimension_numbers = #tpu.dot_dimension_numbers<[2], [2], [1], [1], [0, 0, 0, 1, 1, 1], [0], [0]>} : vector<3x8x8xf32>, vector<3x8x8xf32>, vector<3x8x8xf32> -> vector<3x8x8xf32>
    "tpu.trace_stop"() : () -> ()
    %cst_33 = arith.constant 0.353553385 : f32
    %96 = vector.broadcast %cst_33 : f32 to vector<3x8x8xf32>
    %97 = arith.mulf %95, %96 : vector<3x8x8xf32>
    %98 = tpu.iota {dimensions = array<i32: 0>} : vector<8x8xi32>
    %99 = tpu.iota {dimensions = array<i32: 1>} : vector<8x8xi32>
    %100 = arith.cmpi sle, %99, %98 : vector<8x8xi32>
    %101 = vector.shape_cast %100 : vector<8x8xi1> to vector<1x8x8xi1>
    %cst_34 = arith.constant -1.000000e+30 : f32
    %102 = vector.shape_cast %101 : vector<1x8x8xi1> to vector<1x8x8xi1>
    %103 = vector.broadcast %102 : vector<1x8x8xi1> to vector<3x8x8xi1>
    %104 = vector.broadcast %cst_34 : f32 to vector<3x8x8xf32>
    %105 = arith.select %103, %97, %104 : vector<3x8x8xi1>, vector<3x8x8xf32>
    %cst_35 = arith.constant dense<0xFF800000> : vector<3x8xf32>
    %106 = vector.multi_reduction <maximumf>, %105, %cst_35 [2] : vector<3x8x8xf32> to vector<3x8xf32>
    %107 = vector.shape_cast %106 : vector<3x8xf32> to vector<3x8x1xf32>
    %108 = vector.broadcast %107 : vector<3x8x1xf32> to vector<3x8x8xf32>
    %109 = arith.subf %105, %108 : vector<3x8x8xf32>
    %110 = math.exp %109 : vector<3x8x8xf32>
    %cst_36 = arith.constant dense<0.000000e+00> : vector<3x8xf32>
    %111 = vector.multi_reduction <add>, %110, %cst_36 [2] : vector<3x8x8xf32> to vector<3x8xf32>
    %112 = vector.shape_cast %111 : vector<3x8xf32> to vector<3x8x1xf32>
    %113 = vector.broadcast %112 : vector<3x8x1xf32> to vector<3x8x8xf32>
    %114 = arith.divf %110, %113 : vector<3x8x8xf32>
    "tpu.trace_start"() <{level = 10 : i32, message = "bqk,bkc->bqc"}> : () -> ()
    %cst_37 = arith.constant dense<0.000000e+00> : vector<3x8x8xf32>
    %115 = tpu.matmul %114, %94, %cst_37 {dimension_numbers = #tpu.dot_dimension_numbers<[2], [1], [1], [2], [0, 0, 0, 1, 1, 2], [0], [0]>} : vector<3x8x8xf32>, vector<3x8x8xf32>, vector<3x8x8xf32> -> vector<3x8x8xf32>
    "tpu.trace_stop"() : () -> ()
    %116 = vector.extract_strided_slice %41 {offsets = [0, 0, 24], sizes = [3, 8, 8], strides = [1, 1, 1]} : vector<3x8x32xf32> to vector<3x8x8xf32>
    %117 = vector.extract_strided_slice %42 {offsets = [0, 0, 24], sizes = [3, 8, 8], strides = [1, 1, 1]} : vector<3x8x32xf32> to vector<3x8x8xf32>
    %118 = vector.extract_strided_slice %43 {offsets = [0, 0, 24], sizes = [3, 8, 8], strides = [1, 1, 1]} : vector<3x8x32xf32> to vector<3x8x8xf32>
    "tpu.trace_start"() <{level = 10 : i32, message = "bqc,bkc->bqk"}> : () -> ()
    %cst_38 = arith.constant dense<0.000000e+00> : vector<3x8x8xf32>
    %119 = tpu.matmul %116, %117, %cst_38 {dimension_numbers = #tpu.dot_dimension_numbers<[2], [2], [1], [1], [0, 0, 0, 1, 1, 1], [0], [0]>} : vector<3x8x8xf32>, vector<3x8x8xf32>, vector<3x8x8xf32> -> vector<3x8x8xf32>
    "tpu.trace_stop"() : () -> ()
    %cst_39 = arith.constant 0.353553385 : f32
    %120 = vector.broadcast %cst_39 : f32 to vector<3x8x8xf32>
    %121 = arith.mulf %119, %120 : vector<3x8x8xf32>
    %122 = tpu.iota {dimensions = array<i32: 0>} : vector<8x8xi32>
    %123 = tpu.iota {dimensions = array<i32: 1>} : vector<8x8xi32>
    %124 = arith.cmpi sle, %123, %122 : vector<8x8xi32>
    %125 = vector.shape_cast %124 : vector<8x8xi1> to vector<1x8x8xi1>
    %cst_40 = arith.constant -1.000000e+30 : f32
    %126 = vector.shape_cast %125 : vector<1x8x8xi1> to vector<1x8x8xi1>
    %127 = vector.broadcast %126 : vector<1x8x8xi1> to vector<3x8x8xi1>
    %128 = vector.broadcast %cst_40 : f32 to vector<3x8x8xf32>
    %129 = arith.select %127, %121, %128 : vector<3x8x8xi1>, vector<3x8x8xf32>
    %cst_41 = arith.constant dense<0xFF800000> : vector<3x8xf32>
    %130 = vector.multi_reduction <maximumf>, %129, %cst_41 [2] : vector<3x8x8xf32> to vector<3x8xf32>
    %131 = vector.shape_cast %130 : vector<3x8xf32> to vector<3x8x1xf32>
    %132 = vector.broadcast %131 : vector<3x8x1xf32> to vector<3x8x8xf32>
    %133 = arith.subf %129, %132 : vector<3x8x8xf32>
    %134 = math.exp %133 : vector<3x8x8xf32>
    %cst_42 = arith.constant dense<0.000000e+00> : vector<3x8xf32>
    %135 = vector.multi_reduction <add>, %134, %cst_42 [2] : vector<3x8x8xf32> to vector<3x8xf32>
    %136 = vector.shape_cast %135 : vector<3x8xf32> to vector<3x8x1xf32>
    %137 = vector.broadcast %136 : vector<3x8x1xf32> to vector<3x8x8xf32>
    %138 = arith.divf %134, %137 : vector<3x8x8xf32>
    "tpu.trace_start"() <{level = 10 : i32, message = "bqk,bkc->bqc"}> : () -> ()
    %cst_43 = arith.constant dense<0.000000e+00> : vector<3x8x8xf32>
    %139 = tpu.matmul %138, %118, %cst_43 {dimension_numbers = #tpu.dot_dimension_numbers<[2], [1], [1], [2], [0, 0, 0, 1, 1, 2], [0], [0]>} : vector<3x8x8xf32>, vector<3x8x8xf32>, vector<3x8x8xf32> -> vector<3x8x8xf32>
    "tpu.trace_stop"() : () -> ()
    %140 = tpu.concatenate %67, %91, %115, %139 in 2 : vector<3x8x8xf32>, vector<3x8x8xf32>, vector<3x8x8xf32>, vector<3x8x8xf32> -> vector<3x8x32xf32>
    %c0_44 = arith.constant 0 : index
    %c0_45 = arith.constant 0 : index
    %c0_46 = arith.constant 0 : index
    %141 = vector.load %arg7[%c0_44, %c0_45, %c0_46] : memref<1x32x32xf32, #tpu.memory_space<vmem>>, vector<1x32x32xf32>
    %142 = vector.shape_cast %141 : vector<1x32x32xf32> to vector<1x32x32xf32>
    %143 = vector.broadcast %142 : vector<1x32x32xf32> to vector<3x32x32xf32>
    "tpu.trace_start"() <{level = 10 : i32, message = "bsk,bkn->bsn"}> : () -> ()
    %cst_47 = arith.constant dense<0.000000e+00> : vector<3x8x32xf32>
    %144 = tpu.matmul %140, %143, %cst_47 {dimension_numbers = #tpu.dot_dimension_numbers<[2], [1], [1], [2], [0, 0, 0, 1, 1, 2], [0], [0]>} : vector<3x8x32xf32>, vector<3x32x32xf32>, vector<3x8x32xf32> -> vector<3x8x32xf32>
    "tpu.trace_stop"() : () -> ()
    %c0_48 = arith.constant 0 : index
    %c0_49 = arith.constant 0 : index
    %c0_50 = arith.constant 0 : index
    %145 = vector.load %arg8[%c0_48, %c0_49, %c0_50] : memref<1x1x32xf32, #tpu.memory_space<vmem>>, vector<1x1x32xf32>
    %146 = vector.shape_cast %145 : vector<1x1x32xf32> to vector<1x32xf32>
    %147 = vector.shape_cast %146 : vector<1x32xf32> to vector<1x1x32xf32>
    %148 = vector.broadcast %147 : vector<1x1x32xf32> to vector<3x8x32xf32>
    %149 = arith.addf %144, %148 : vector<3x8x32xf32>
    %150 = arith.addf %3, %149 : vector<3x8x32xf32>
    %cst_51 = arith.constant dense<0.000000e+00> : vector<3x8xf32>
    %151 = vector.multi_reduction <add>, %150, %cst_51 [2] : vector<3x8x32xf32> to vector<3x8xf32>
    %152 = vector.shape_cast %151 : vector<3x8xf32> to vector<3x8x1xf32>
    %cst_52 = arith.constant 3.200000e+01 : f32
    %153 = vector.broadcast %cst_52 : f32 to vector<3x8x1xf32>
    %154 = arith.divf %152, %153 : vector<3x8x1xf32>
    %155 = vector.broadcast %154 : vector<3x8x1xf32> to vector<3x8x32xf32>
    %156 = arith.subf %150, %155 : vector<3x8x32xf32>
    %157 = arith.mulf %156, %156 : vector<3x8x32xf32>
    %cst_53 = arith.constant dense<0.000000e+00> : vector<3x8xf32>
    %158 = vector.multi_reduction <add>, %157, %cst_53 [2] : vector<3x8x32xf32> to vector<3x8xf32>
    %159 = vector.shape_cast %158 : vector<3x8xf32> to vector<3x8x1xf32>
    %cst_54 = arith.constant 3.200000e+01 : f32
    %160 = vector.broadcast %cst_54 : f32 to vector<3x8x1xf32>
    %161 = arith.divf %159, %160 : vector<3x8x1xf32>
    %162 = vector.broadcast %154 : vector<3x8x1xf32> to vector<3x8x32xf32>
    %163 = arith.subf %150, %162 : vector<3x8x32xf32>
    %cst_55 = arith.constant 9.99999974E-6 : f32
    %164 = vector.broadcast %cst_55 : f32 to vector<3x8x1xf32>
    %165 = arith.addf %161, %164 : vector<3x8x1xf32>
    %166 = math.rsqrt %165 : vector<3x8x1xf32>
    %167 = vector.broadcast %166 : vector<3x8x1xf32> to vector<3x8x32xf32>
    %168 = arith.mulf %163, %167 : vector<3x8x32xf32>
    %c0_56 = arith.constant 0 : index
    %c0_57 = arith.constant 0 : index
    %c0_58 = arith.constant 0 : index
    %169 = vector.load %arg9[%c0_56, %c0_57, %c0_58] : memref<1x1x32xf32, #tpu.memory_space<vmem>>, vector<1x1x32xf32>
    %170 = vector.shape_cast %169 : vector<1x1x32xf32> to vector<1x32xf32>
    %171 = vector.shape_cast %170 : vector<1x32xf32> to vector<1x1x32xf32>
    %172 = vector.broadcast %171 : vector<1x1x32xf32> to vector<3x8x32xf32>
    %173 = arith.mulf %168, %172 : vector<3x8x32xf32>
    %c0_59 = arith.constant 0 : index
    %c0_60 = arith.constant 0 : index
    %c0_61 = arith.constant 0 : index
    %174 = vector.load %arg10[%c0_59, %c0_60, %c0_61] : memref<1x1x32xf32, #tpu.memory_space<vmem>>, vector<1x1x32xf32>
    %175 = vector.shape_cast %174 : vector<1x1x32xf32> to vector<1x32xf32>
    %176 = vector.shape_cast %175 : vector<1x32xf32> to vector<1x1x32xf32>
    %177 = vector.broadcast %176 : vector<1x1x32xf32> to vector<3x8x32xf32>
    %178 = arith.addf %173, %177 : vector<3x8x32xf32>
    %c0_62 = arith.constant 0 : index
    %c0_63 = arith.constant 0 : index
    %c0_64 = arith.constant 0 : index
    %179 = vector.load %arg11[%c0_62, %c0_63, %c0_64] : memref<1x32x128xf32, #tpu.memory_space<vmem>>, vector<1x32x128xf32>
    %180 = vector.shape_cast %179 : vector<1x32x128xf32> to vector<1x32x128xf32>
    %181 = vector.broadcast %180 : vector<1x32x128xf32> to vector<3x32x128xf32>
    "tpu.trace_start"() <{level = 10 : i32, message = "bsk,bkn->bsn"}> : () -> ()
    %cst_65 = arith.constant dense<0.000000e+00> : vector<3x8x128xf32>
    %182 = tpu.matmul %178, %181, %cst_65 {dimension_numbers = #tpu.dot_dimension_numbers<[2], [1], [1], [2], [0, 0, 0, 1, 1, 2], [0], [0]>} : vector<3x8x32xf32>, vector<3x32x128xf32>, vector<3x8x128xf32> -> vector<3x8x128xf32>
    "tpu.trace_stop"() : () -> ()
    %c0_66 = arith.constant 0 : index
    %c0_67 = arith.constant 0 : index
    %c0_68 = arith.constant 0 : index
    %183 = vector.load %arg12[%c0_66, %c0_67, %c0_68] : memref<1x1x128xf32, #tpu.memory_space<vmem>>, vector<1x1x128xf32>
    %184 = vector.shape_cast %183 : vector<1x1x128xf32> to vector<1x128xf32>
    %185 = vector.shape_cast %184 : vector<1x128xf32> to vector<1x1x128xf32>
    %186 = vector.broadcast %185 : vector<1x1x128xf32> to vector<3x8x128xf32>
    %187 = arith.addf %182, %186 : vector<3x8x128xf32>
    %cst_69 = arith.constant 1.702000e+00 : f32
    %188 = vector.broadcast %cst_69 : f32 to vector<3x8x128xf32>
    %189 = arith.mulf %188, %187 : vector<3x8x128xf32>
    %190 = arith.negf %189 : vector<3x8x128xf32>
    %191 = math.exp %190 : vector<3x8x128xf32>
    %cst_70 = arith.constant 1.000000e+00 : f32
    %192 = vector.broadcast %cst_70 : f32 to vector<3x8x128xf32>
    %193 = arith.addf %192, %191 : vector<3x8x128xf32>
    %194 = arith.divf %192, %193 : vector<3x8x128xf32>
    %195 = arith.mulf %187, %194 : vector<3x8x128xf32>
    %c0_71 = arith.constant 0 : index
    %c0_72 = arith.constant 0 : index
    %c0_73 = arith.constant 0 : index
    %196 = vector.load %arg13[%c0_71, %c0_72, %c0_73] : memref<1x128x32xf32, #tpu.memory_space<vmem>>, vector<1x128x32xf32>
    %197 = vector.shape_cast %196 : vector<1x128x32xf32> to vector<1x128x32xf32>
    %198 = vector.broadcast %197 : vector<1x128x32xf32> to vector<3x128x32xf32>
    "tpu.trace_start"() <{level = 10 : i32, message = "bsk,bkn->bsn"}> : () -> ()
    %cst_74 = arith.constant dense<0.000000e+00> : vector<3x8x32xf32>
    %199 = tpu.matmul %195, %198, %cst_74 {dimension_numbers = #tpu.dot_dimension_numbers<[2], [1], [1], [2], [0, 0, 0, 1, 1, 2], [0], [0]>} : vector<3x8x128xf32>, vector<3x128x32xf32>, vector<3x8x32xf32> -> vector<3x8x32xf32>
    "tpu.trace_stop"() : () -> ()
    %c0_75 = arith.constant 0 : index
    %c0_76 = arith.constant 0 : index
    %c0_77 = arith.constant 0 : index
    %200 = vector.load %arg14[%c0_75, %c0_76, %c0_77] : memref<1x1x32xf32, #tpu.memory_space<vmem>>, vector<1x1x32xf32>
    %201 = vector.shape_cast %200 : vector<1x1x32xf32> to vector<1x32xf32>
    %202 = vector.shape_cast %201 : vector<1x32xf32> to vector<1x1x32xf32>
    %203 = vector.broadcast %202 : vector<1x1x32xf32> to vector<3x8x32xf32>
    %204 = arith.addf %199, %203 : vector<3x8x32xf32>
    %205 = arith.addf %150, %204 : vector<3x8x32xf32>
    %c0_78 = arith.constant 0 : index
    %c0_79 = arith.constant 0 : index
    %c0_80 = arith.constant 0 : index
    %206 = vector.load %arg19[%c0_78, %c0_79, %c0_80] : memref<3x8x32xf32, #tpu.memory_space<vmem>>, vector<3x8x32xf32>
    tpu.vector_store %arg19[%c0_78, %c0_79, %c0_80], %205 {strides = array<i32>} : memref<3x8x32xf32, #tpu.memory_space<vmem>>, vector<3x8x32xf32>,
    %c2_i32 = arith.constant 2 : i32
    %207 = arith.cmpi eq, %arg0, %c2_i32 : i32
    %208 = arith.extui %207 : i1 to i32
    %c0_i32_81 = arith.constant 0 : i32
    %209 = arith.cmpi ne, %208, %c0_i32_81 : i32
    scf.if %209 {
      %c0_82 = arith.constant 0 : index
      %c0_83 = arith.constant 0 : index
      %c0_84 = arith.constant 0 : index
      %210 = vector.load %arg2[%c0_82, %c0_83, %c0_84] : memref<3x8x1xf32, #tpu.memory_space<vmem>>, vector<3x8x1xf32>
      %211 = vector.broadcast %210 : vector<3x8x1xf32> to vector<3x8x32xf32>
      %212 = arith.mulf %211, %205 : vector<3x8x32xf32>
      %cst_85 = arith.constant dense<0.000000e+00> : vector<3x32xf32>
      %213 = vector.multi_reduction <add>, %212, %cst_85 [1] : vector<3x8x32xf32> to vector<3x32xf32>
      %cst_86 = arith.constant dense<0.000000e+00> : vector<3xf32>
      %214 = vector.multi_reduction <add>, %213, %cst_86 [1] : vector<3x32xf32> to vector<3xf32>
      %215 = vector.shape_cast %214 : vector<3xf32> to vector<3x1xf32>
      %cst_87 = arith.constant 3.200000e+01 : f32
      %216 = vector.broadcast %cst_87 : f32 to vector<3x1xf32>
      %217 = arith.divf %215, %216 : vector<3x1xf32>
      %218 = vector.broadcast %217 : vector<3x1xf32> to vector<3x32xf32>
      %219 = arith.subf %213, %218 : vector<3x32xf32>
      %220 = arith.mulf %219, %219 : vector<3x32xf32>
      %cst_88 = arith.constant dense<0.000000e+00> : vector<3xf32>
      %221 = vector.multi_reduction <add>, %220, %cst_88 [1] : vector<3x32xf32> to vector<3xf32>
      %222 = vector.shape_cast %221 : vector<3xf32> to vector<3x1xf32>
      %cst_89 = arith.constant 3.200000e+01 : f32
      %223 = vector.broadcast %cst_89 : f32 to vector<3x1xf32>
      %224 = arith.divf %222, %223 : vector<3x1xf32>
      %225 = vector.broadcast %217 : vector<3x1xf32> to vector<3x32xf32>
      %226 = arith.subf %213, %225 : vector<3x32xf32>
      %cst_90 = arith.constant 9.99999974E-6 : f32
      %227 = vector.broadcast %cst_90 : f32 to vector<3x1xf32>
      %228 = arith.addf %224, %227 : vector<3x1xf32>
      %229 = math.rsqrt %228 : vector<3x1xf32>
      %230 = vector.broadcast %229 : vector<3x1xf32> to vector<3x32xf32>
      %231 = arith.mulf %226, %230 : vector<3x32xf32>
      %c0_91 = arith.constant 0 : index
      %c0_92 = arith.constant 0 : index
      %232 = vector.load %arg15[%c0_91, %c0_92] : memref<1x32xf32, #tpu.memory_space<vmem>>, vector<1x32xf32>
      %233 = vector.shape_cast %232 : vector<1x32xf32> to vector<32xf32>
      %234 = vector.shape_cast %233 : vector<32xf32> to vector<1x32xf32>
      %235 = vector.broadcast %234 : vector<1x32xf32> to vector<3x32xf32>
      %236 = arith.mulf %231, %235 : vector<3x32xf32>
      %c0_93 = arith.constant 0 : index
      %c0_94 = arith.constant 0 : index
      %237 = vector.load %arg16[%c0_93, %c0_94] : memref<1x32xf32, #tpu.memory_space<vmem>>, vector<1x32xf32>
      %238 = vector.shape_cast %237 : vector<1x32xf32> to vector<32xf32>
      %239 = vector.shape_cast %238 : vector<32xf32> to vector<1x32xf32>
      %240 = vector.broadcast %239 : vector<1x32xf32> to vector<3x32xf32>
      %241 = arith.addf %236, %240 : vector<3x32xf32>
      %c0_95 = arith.constant 0 : index
      %c0_96 = arith.constant 0 : index
      %242 = vector.load %arg17[%c0_95, %c0_96] : memref<32x32xf32, #tpu.memory_space<vmem>>, vector<32x32xf32>
      %cst_97 = arith.constant dense<0.000000e+00> : vector<3x32xf32>
      %243 = tpu.matmul %241, %242, %cst_97 {dimension_numbers = #tpu.dot_dimension_numbers<[1], [0], [0], [1], [0, 0, 1, 1], [], []>} : vector<3x32xf32>, vector<32x32xf32>, vector<3x32xf32> -> vector<3x32xf32>
      %c0_98 = arith.constant 0 : index
      %c0_99 = arith.constant 0 : index
      %244 = vector.load %arg18[%c0_98, %c0_99] : memref<3x32xf32, #tpu.memory_space<vmem>>, vector<3x32xf32>
      tpu.vector_store %arg18[%c0_98, %c0_99], %243 {strides = array<i32>} : memref<3x32xf32, #tpu.memory_space<vmem>>, vector<3x32xf32>,
    } else {
    }
    return
  }
  func.func @transform_0(%arg0: i32) -> (i32, i32, i32) {
    %c0_i32 = arith.constant 0 : i32
    %c0_i32_0 = arith.constant 0 : i32
    %c0_i32_1 = arith.constant 0 : i32
    %c0_i32_2 = arith.constant 0 : i32
    return %c0_i32, %c0_i32_0, %c0_i32_1 : i32, i32, i32
  }
  func.func @transform_1(%arg0: i32) -> (i32, i32, i32) {
    %c0_i32 = arith.constant 0 : i32
    %c0_i32_0 = arith.constant 0 : i32
    %c0_i32_1 = arith.constant 0 : i32
    %c0_i32_2 = arith.constant 0 : i32
    return %c0_i32, %c0_i32_0, %c0_i32_1 : i32, i32, i32
  }
  func.func @transform_2(%arg0: i32) -> (i32, i32, i32) {
    %c0_i32 = arith.constant 0 : i32
    %c0_i32_0 = arith.constant 0 : i32
    %c0_i32_1 = arith.constant 0 : i32
    return %arg0, %c0_i32, %c0_i32_0 : i32, i32, i32
  }
  func.func @transform_3(%arg0: i32) -> (i32, i32, i32) {
    %c0_i32 = arith.constant 0 : i32
    %c0_i32_0 = arith.constant 0 : i32
    %c0_i32_1 = arith.constant 0 : i32
    return %arg0, %c0_i32, %c0_i32_0 : i32, i32, i32
  }
  func.func @transform_4(%arg0: i32) -> (i32, i32, i32) {
    %c0_i32 = arith.constant 0 : i32
    %c0_i32_0 = arith.constant 0 : i32
    %c0_i32_1 = arith.constant 0 : i32
    return %arg0, %c0_i32, %c0_i32_0 : i32, i32, i32
  }
  func.func @transform_5(%arg0: i32) -> (i32, i32, i32) {
    %c0_i32 = arith.constant 0 : i32
    %c0_i32_0 = arith.constant 0 : i32
    %c0_i32_1 = arith.constant 0 : i32
    return %arg0, %c0_i32, %c0_i32_0 : i32, i32, i32
  }
  func.func @transform_6(%arg0: i32) -> (i32, i32, i32) {
    %c0_i32 = arith.constant 0 : i32
    %c0_i32_0 = arith.constant 0 : i32
    %c0_i32_1 = arith.constant 0 : i32
    return %arg0, %c0_i32, %c0_i32_0 : i32, i32, i32
  }
  func.func @transform_7(%arg0: i32) -> (i32, i32, i32) {
    %c0_i32 = arith.constant 0 : i32
    %c0_i32_0 = arith.constant 0 : i32
    %c0_i32_1 = arith.constant 0 : i32
    return %arg0, %c0_i32, %c0_i32_0 : i32, i32, i32
  }
  func.func @transform_8(%arg0: i32) -> (i32, i32, i32) {
    %c0_i32 = arith.constant 0 : i32
    %c0_i32_0 = arith.constant 0 : i32
    %c0_i32_1 = arith.constant 0 : i32
    return %arg0, %c0_i32, %c0_i32_0 : i32, i32, i32
  }
  func.func @transform_9(%arg0: i32) -> (i32, i32, i32) {
    %c0_i32 = arith.constant 0 : i32
    %c0_i32_0 = arith.constant 0 : i32
    %c0_i32_1 = arith.constant 0 : i32
    return %arg0, %c0_i32, %c0_i32_0 : i32, i32, i32
  }
  func.func @transform_10(%arg0: i32) -> (i32, i32, i32) {
    %c0_i32 = arith.constant 0 : i32
    %c0_i32_0 = arith.constant 0 : i32
    %c0_i32_1 = arith.constant 0 : i32
    return %arg0, %c0_i32, %c0_i32_0 : i32, i32, i32
  }
  func.func @transform_11(%arg0: i32) -> (i32, i32, i32) {
    %c0_i32 = arith.constant 0 : i32
    %c0_i32_0 = arith.constant 0 : i32
    %c0_i32_1 = arith.constant 0 : i32
    return %arg0, %c0_i32, %c0_i32_0 : i32, i32, i32
  }
  func.func @transform_12(%arg0: i32) -> (i32, i32, i32) {
    %c0_i32 = arith.constant 0 : i32
    %c0_i32_0 = arith.constant 0 : i32
    %c0_i32_1 = arith.constant 0 : i32
    return %arg0, %c0_i32, %c0_i32_0 : i32, i32, i32
  }
  func.func @transform_13(%arg0: i32) -> (i32, i32, i32) {
    %c0_i32 = arith.constant 0 : i32
    %c0_i32_0 = arith.constant 0 : i32
    %c0_i32_1 = arith.constant 0 : i32
    return %arg0, %c0_i32, %c0_i32_0 : i32, i32, i32
  }
  func.func @transform_14(%arg0: i32) -> (i32, i32) {
    %c0_i32 = arith.constant 0 : i32
    %c0_i32_0 = arith.constant 0 : i32
    %c0_i32_1 = arith.constant 0 : i32
    return %c0_i32, %c0_i32_0 : i32, i32
  }
  func.func @transform_15(%arg0: i32) -> (i32, i32) {
    %c0_i32 = arith.constant 0 : i32
    %c0_i32_0 = arith.constant 0 : i32
    %c0_i32_1 = arith.constant 0 : i32
    return %c0_i32, %c0_i32_0 : i32, i32
  }
  func.func @transform_16(%arg0: i32) -> (i32, i32) {
    %c0_i32 = arith.constant 0 : i32
    %c0_i32_0 = arith.constant 0 : i32
    %c0_i32_1 = arith.constant 0 : i32
    return %c0_i32, %c0_i32_0 : i32, i32
  }
  func.func @transform_17(%arg0: i32) -> (i32, i32) {
    %c0_i32 = arith.constant 0 : i32
    %c0_i32_0 = arith.constant 0 : i32
    %c0_i32_1 = arith.constant 0 : i32
    return %c0_i32, %c0_i32_0 : i32, i32
  }
}

</mosaic_0001>

<bundles_post_ra>
// kernel: _zs_text.1
= control target key start
LH: loop header
LB: loop body
LE: loop exit
PB: predicated region body
PF: predicated region fallthrough
CT: control target
= control target key end

     0   :  { %s5108_s24 = smov 0   ;;  %s5670_s0 = inlined_call_operand.vmem [shape: f32[3,8,32], index: 0, kind: input, shape index: {}]   ;;  %s5671_s1 = inlined_call_operand.vmem [shape: f32[3,8,1], index: 1, kind: input, shape index: {}]   ;;  %s5672_s2 = inlined_call_operand.vmem [shape: f32[3,1,32], index: 2, kind: input, shape index: {}]   ;;  %s5673_s3 = inlined_call_operand.vmem [shape: f32[3,1,32], index: 3, kind: input, shape index: {}]   ;;  %s5674_s4 = inlined_call_operand.vmem [shape: f32[3,32,96], index: 4, kind: input, shape index: {}]   ;;  %s5675_s5 = inlined_call_operand.vmem [shape: f32[3,1,96], index: 5, kind: input, shape index: {}]   ;;  %s5676_s6 = inlined_call_operand.vmem [shape: f32[3,32,32], index: 6, kind: input, shape index: {}]   ;;  %s5677_s7 = inlined_call_operand.vmem [shape: f32[3,1,32], index: 7, kind: input, shape index: {}]   ;;  %s5678_s8 = inlined_call_operand.vmem [shape: f32[3,1,32], index: 8, kind: input, shape index: {}]   ;;  %s5679_s9 = inlined_call_operand.vmem [shape: f32[3,1,32], index: 9, kind: input, shape index: {}]   ;;  %s5680_s10 = inlined_call_operand.vmem [shape: f32[3,32,128], index: 10, kind: input, shape index: {}]   ;;  %s5681_s11 = inlined_call_operand.vmem [shape: f32[3,1,128], index: 11, kind: input, shape index: {}]   ;;  %s5682_s12 = inlined_call_operand.vmem [shape: f32[3,128,32], index: 12, kind: input, shape index: {}]   ;;  %s5683_s13 = inlined_call_operand.vmem [shape: f32[3,1,32], index: 13, kind: input, shape index: {}]   ;;  %s5684_s14 = inlined_call_operand.vmem [shape: f32[1,32], index: 14, kind: input, shape index: {}]   ;;  %s5685_s15 = inlined_call_operand.vmem [shape: f32[1,32], index: 15, kind: input, shape index: {}]   ;;  %s5686_s16 = inlined_call_operand.vmem [shape: f32[32,32], index: 16, kind: input, shape index: {}]   ;;  %s5687_s17 = inlined_call_operand.vmem [shape: f32[3,32], index: 17, kind: output, shape index: {}]  }
   0x1   :  { %5692 = sst [smem:[#allocation4_spill]] %s5670_s0 }
   0x2   :  { %5693 = sst [smem:[#allocation5_spill]] %s5671_s1 }
   0x3   :  { %5694 = sst [smem:[#allocation6_spill]] %s5674_s4 }
   0x4   :  { %5695 = sst [smem:[#allocation7_spill]] %s5676_s6 }
   0x5   :  { %5696 = sst [smem:[#allocation8_spill]] %s5684_s14 }
   0x6   :  { %5697 = sst [smem:[#allocation9_spill]] %s5685_s15 }
   0x7   :  { %5698 = sst [smem:[#allocation10_spill]] %s5686_s16 }
   0x8   :  { %5699 = sst [smem:[#allocation11_spill]] %s5687_s17 }
   0x9 LB: > { %5700 = sst [smem:[#allocation3_spill]] %s4995_s24  ;;  %s5114_s25 = sadd.s32 4294967295, %s4995_s24   ;;  %s4995_s24 = sphi %s5108_s24, %s27_s24  }
   0xa   : > { %p4189_p0 = scmp.ge.s32.totalorder %s4995_s24, 1  ;;  %p576_p1 = scmp.lt.s32.totalorder %s4995_s24, 4 }
   0xc   : > { %p577_p2 = pnand %p4189_p0, %p576_p1 }
   0xd   : > { %p662_p3 = scmp.lt.s32.totalorder (!%p577_p2), %s5114_s25, 2  ;;  %s5701_s4 = sld [smem:[#allocation6_spill]] (!%p577_p2) }
   0xe   : > { %580 = sbr.rel (%p577_p2) target bundleno = 4886 (0x1316), region = 88  ;;  %s5702_s6 = sld [smem:[#allocation7_spill]] (!%p577_p2) }
   0xf   : > { %p4198_p4 = scmp.ne.s32.totalorder (!%p577_p2), %s5114_s25, 0 }
  0x15   : > { %s5120_s26 = scalar_select %p662_p3, %s5114_s25, 2 }
  0x16   : > { %709 = sbr.rel (%p4198_p4) target bundleno = 31 (0x1f), region = 92  ;;  %s5703_s22 = sld [smem:[#allocation4_spill]] (!%p4198_p4)  ;;  %vm713_vm0 = vcmask (!%p4198_p4), 261120  }
  0x17   : > { %s4261_s19 = sshll.u32 %s5120_s26, 5  ;;  %s686_s14 = scalar_lea.vmem %s5678_s8, %s5120_s26 }
  0x18   : > { %s5138_s27 = scalar_lea.vmem %s5701_s4, %s4261_s19  ;;  %s5143_s17 = scalar_lea.vmem %s5702_s6, %s4261_s19 }
  0x19   : > { %s689_s21 = scalar_lea.vmem %s5679_s9, %s5120_s26  ;;  %s5160_s4 = scalar_lea.vmem %s5680_s10, %s4261_s19 }
  0x1a   : > { %s697_s6 = scalar_lea.vmem %s5681_s11, %s5120_s26  ;;  %s4264_s16 = sshll.u32 %s5120_s26, 7 }
  0x1b   : > { %s5170_s0 = scalar_lea.vmem %s5682_s12, %s4264_s16  ;;  %s705_s1 = scalar_lea.vmem %s5683_s13, %s5120_s26 }
  0x1c   : > { %v710_v0 = vld [vmem:[%s5703_s22] sm:$0xff] (!%p4198_p4)  ;;  %v711_v1 = vld [vmem:[%s5703_s22 + $0x8] sm:$0xff] (!%p4198_p4)  ;;  %v712_v2 = vld [vmem:[%s5703_s22 + $0x10] sm:$0xff] (!%p4198_p4) }
  0x1d   : > { %714 = vst.msk [vmem:[#allocation2] sm:$0xff] %vm713_vm0, %v710_v0  ;;  %715 = vst.msk [vmem:[#allocation2 + $0x8] sm:$0xff] %vm713_vm0, %v711_v1 }
  0x1e   : > { %716 = vst.msk [vmem:[#allocation2 + $0x10] sm:$0xff] %vm713_vm0, %v712_v2 }
  0x1f PF: > { %vm720_vm1 = vcmask 261120   ;;  %v781_v24 = vld [vmem:[%s5138_s27] sm:$0xff]  ;;  %v782_v25 = vld [vmem:[%s5138_s27 + $0x8] sm:$0xff]  ;;  %v4997_v27 = vmov 0.0|0.0   ;;  %v783_v28 = vld [vmem:[%s5138_s27 + $0x10] sm:$0xff]  ;;  %vm4998_vm2 = vmmov 0   ;;  %s5704_s29 = scalar_lea.vmem %s5672_s2, %s5120_s26  ;;  %s5705_s20 = scalar_lea.vmem %s5673_s3, %s5120_s26 }
  0x20   : > { %v4750_v26 = vpack.c.bf16 %v782_v25, %v781_v24  ;;  %4749 = vmatprep.subr.bf16.mxu1 %v4997_v27  ;;  %v784_v29 = vld [vmem:[%s5138_s27 + $0x18] sm:$0xff]  ;;  %v4999_v31 = vmov 0.0   ;;  %v4199_v42 = vld [vmem:[%s5704_s29] ss:$0 sm:$0xff]  ;;  %s5706_s24 = scalar_lea.vmem %s5675_s5, %s5120_s26  ;;  %s5000_s28 = smov 96   ;;  %vm1014_vm3 = vcmask 64512  }
  0x21   : > { %v4753_v30 = vpack.c.bf16 %v784_v29, %v783_v28  ;;  %4422 = vmatprep.mubr.msk.f32.mxu1 %vm4998_vm2, %v4999_v31  ;;  %4457 = vmatprep.subr.mxu0 %v4999_v31  ;;  %v4200_v44 = vld [vmem:[%s5705_s20] ss:$0 sm:$0xff]  ;;  %s5001_s15 = smov 64   ;;  %s5002_s16 = smov 88   ;;  %vm3059_vm5 = vcmask 130048   ;;  %vm3063_vm6 = vcmask 195584  }
  0x22   : > { %4751 = vmatpush3.bf16.msra.mxu1 %v4750_v26  ;;  %4459 = vmatprep.mubr.msk.f32.mxu0 %vm4998_vm2, %v4999_v31  ;;  %v4201_v55 = vld [vmem:[%s5706_s24] ss:$0 sm:$0xff]  ;;  %s5003_s27 = smov 120   ;;  %s5004_s29 = smov 56  }
  0x23   : > { %4752 = vmatprep.subr.bf16.mxu1 %v4997_v27  ;;  %s5005_s18 = smov 80   ;;  %s5006_s30 = smov 112  }
  0x24   : > { %s5007_s20 = smov 48   ;;  %s5008_s19 = smov 72  }
  0x25   : > { %v719_v4 = vld [vmem:[#allocation2 + $0x10] sm:$0xff]  ;;  %s5009_s23 = smov 104   ;;  %s5010_s24 = smov 40  }
  0x26   : > { %v717_v3 = vld [vmem:[#allocation2] sm:$0xff]  ;;  %v718_v5 = vld [vmem:[#allocation2 + $0x8] sm:$0xff]  ;;  %v727_v7 = vsel %vm720_vm1, %v719_v4, 0.0  ;;  %4754 = vmatpush3.bf16.msra.mxu1 %v4753_v30  ;;  %p4255_p5 = scmp.ne.s32.totalorder %s5114_s25, 2 }
  0x27   : > { %v721_v6 = vsel %vm720_vm1, %v717_v3, 0.0  ;;  %728 = vadd.xlane.f32.xlu1 %v727_v7  ;;  %v724_v8 = vsel %vm720_vm1, %v718_v5, 0.0  ;;  %4755 = vmatprep.subr.bf16.mxu1 %v4997_v27  ;;  %vm3901_vm7 = vcmask (!%p4255_p5), 1041409   ;;  %vm3903_vm8 = vcmask (!%p4255_p5), 1042434  }
  0x28   : > { %722 = vadd.xlane.f32.xlu0 %v721_v6  ;;  %vm3906_vm9 = vcmask (!%p4255_p5), 256000   ;;  %vm5016_vm10 = vmmov (!%p4255_p5), 0  }
  0x2c   : > { %725 = vadd.xlane.f32.xlu0 %v724_v8 }
  0xb4   : > { %v729_v10 = vpop.xlane.xlu1 %728 }
  0xb5   : > { %v723_v9 = vpop.xlane.xlu0 %722  ;;  %v733_v12 = vmul.f32 0.03125, %v729_v10 }
  0xb6   : > { %v731_v11 = vmul.f32 0.03125, %v723_v9 }
  0xb7   : > { %v736_v14 = vsub.f32 %v719_v4, %v733_v12  ;;  %v1246_v4 = vlaneseq }
  0xb8   : > { %v734_v13 = vsub.f32 %v717_v3, %v731_v11 }
  0xb9   : > { %v726_v15 = vpop.xlane.xlu0 %725  ;;  %v739_v18 = vmul.f32 %v736_v14, %v736_v14  ;;  %v1249_v6 = vand.u32 127, %v1246_v4 }
  0xba   : > { %v732_v16 = vmul.f32 0.03125, %v726_v15  ;;  %v737_v17 = vmul.f32 %v734_v13, %v734_v13 }
  0xbb   : > { %v746_v21 = vsel %vm720_vm1, %v739_v18, 0.0 }
  0xbc   : > { %v735_v19 = vsub.f32 %v718_v5, %v732_v16  ;;  %v740_v20 = vsel %vm720_vm1, %v737_v17, 0.0  ;;  %v1247_v5 = vshrl.u32 %v1246_v4, 7 }
  0xbd   : > { %741 = vadd.xlane.f32.xlu1 %v740_v20 }
  0xbe   : > { %v738_v22 = vmul.f32 %v735_v19, %v735_v19  ;;  %vm5259_vm4 = vcmp.le.s32.totalorder %v1249_v6, %v1247_v5 }
  0xc0   : > { %v743_v23 = vsel %vm720_vm1, %v738_v22, 0.0 }
  0xc1   : > { %747 = vadd.xlane.f32.xlu1 %v746_v21  ;;  %744 = vadd.xlane.f32.xlu0 %v743_v23 }
 0x14a   : > { %v742_v32 = vpop.xlane.xlu1 %741 }
 0x14b   : > { %v749_v33 = vmul.f32 0.03125, %v742_v32 }
 0x14d   : > { %v752_v34 = vadd.f32 1e-05, %v749_v33 }
 0x14e   : > { %v748_v35 = vpop.xlane.xlu1 %747  ;;  %v745_v36 = vpop.xlane.xlu0 %744 }
 0x14f   : > { %4910 = vrsqrt.f32 %v752_v34  ;;  %v750_v37 = vmul.f32 0.03125, %v745_v36  ;;  %v751_v38 = vmul.f32 0.03125, %v748_v35 }
 0x151   : > { %v753_v39 = vadd.f32 1e-05, %v750_v37  ;;  %v754_v40 = vadd.f32 1e-05, %v751_v38 }
 0x153   : > { %4912 = vrsqrt.f32 %v753_v39 }
 0x154   : > { %4914 = vrsqrt.f32 %v754_v40 }
 0x159   : > { %v4911_v41 = vpop.eup %4910 }
 0x15a   : > { %v758_v43 = vmul.f32 %v4911_v41, %v734_v13 }
 0x15c   : > { %v768_v45 = vmul.f32 %v4199_v42, %v758_v43 }
 0x15d   : > { %v4913_v46 = vpop.eup %4912 }
 0x15e   : > { %v778_v47 = vadd.f32 %v4200_v44, %v768_v45  ;;  %v759_v48 = vmul.f32 %v4913_v46, %v735_v19  ;;  %v4915_v50 = vpop.eup %4914 }
 0x15f   : > { %v760_v51 = vmul.f32 %v4915_v50, %v736_v14 }
 0x160   : > { %4423 = vmatmul.mubr.msk.f32.vlgmr.msra.gmra.mrb[0].mxu1 %vm720_vm1, %v778_v47  ;;  %v769_v49 = vmul.f32 %v4199_v42, %v759_v48 }
 0x161   : > { %4757 = vmatpush3.bf16.msra.mxu1 %v4750_v26  ;;  %4433 = vmatprep.mubr.msk.f32.mxu1 %vm4998_vm2, %v4999_v31  ;;  %v770_v53 = vmul.f32 %v4199_v42, %v760_v51 }
 0x162   : > { %4758 = vmatprep.subr.bf16.mxu1 %v4997_v27  ;;  %v779_v52 = vadd.f32 %v4200_v44, %v769_v49 }
 0x163   : > { %v780_v54 = vadd.f32 %v4200_v44, %v770_v53 }
 0x165   : > { %4760 = vmatpush3.bf16.msra.mxu1 %v4753_v30 }
 0x166   : > { %4761 = vmatprep.subr.bf16.mxu1 %v4997_v27 }
 0x168   : > { %4434 = vmatmul.mubr.msk.f32.vlgmr.msra.gmra.mrb[2].mxu1 %vm720_vm1, %v779_v52 }
 0x169   : > { %4763 = vmatpush3.bf16.msra.mxu1 %v4750_v26  ;;  %4444 = vmatprep.mubr.msk.f32.mxu1 %vm4998_vm2, %v4999_v31 }
 0x16a   : > { %4764 = vmatprep.subr.bf16.mxu1 %v4997_v27 }
 0x16d   : > { %4766 = vmatpush3.bf16.msra.mxu1 %v4753_v30 }
 0x16e   : > { %4447 = vmatprep.subr.mxu1 %v4999_v31 }
 0x170   : > { %4445 = vmatmul.mubr.msk.f32.vlgmr.msra.gmra.mrb[4].mxu1 %vm720_vm1, %v780_v54 }
 0x171   : > { %4449 = vmatprep.mubr.msk.f32.mxu1 %vm4998_vm2, %v4999_v31 }
 0x233   : > { %v861_v56 = vpop.f32.mrb[0].mxu1 }
 0x234   : > { %v5232_v57 = vadd.f32 %v4201_v55, %v861_v56  ;;  %v4424_v58 = vpop.f32.mrb[1].mxu1 }
 0x236   : > { %1012 = vrot.lane.b32.xlu0 %v5232_v57, %s5000_s28 }
 0x23b   : > { %v934_v59 = vpop.f32.mrb[2].mxu1 }
 0x23c   : > { %v5235_v60 = vadd.f32 %v4201_v55, %v934_v59  ;;  %v4435_v61 = vpop.f32.mrb[3].mxu1 }
 0x23e   : > { %1090 = vrot.lane.b32.xlu1 %v5235_v60, %s5000_s28 }
 0x243   : > { %v1007_v62 = vpop.f32.mrb[4].mxu1 }
 0x244   : > { %v5238_v63 = vadd.f32 %v4201_v55, %v1007_v62  ;;  %v4446_v0 = vpop.f32.mrb[5].mxu1 }
 0x246   : > { %1167 = vrot.lane.b32.xlu1 %v5238_v63, %s5000_s28  ;;  %s5011_s28 = smov 8  }
 0x2a8   : > { %v1013_v1 = vpop.permute.xlu0 %1012 }
 0x2a9   : > { %4448 = vmatpush3.xpose.msk.msra.mxu1 %vm1014_vm3, %v1013_v1 }
 0x2aa   : > { %4452 = vmatprep.subr.mxu1 %v4999_v31 }
 0x2ac   : > { %4450 = vmatmul.mubr.msk.f32.vlgmr.msra.gmra.mrb[6].mxu1 %vm1014_vm3, %v5232_v57 }
 0x2ad   : > { %4454 = vmatprep.mubr.msk.f32.mxu1 %vm4998_vm2, %v4999_v31 }
 0x2b0   : > { %v1091_v2 = vpop.permute.xlu1 %1090 }
 0x2b1   : > { %4453 = vmatpush3.xpose.msk.msra.mxu1 %vm1014_vm3, %v1091_v2 }
 0x2b2   : > { %4462 = vmatprep.subr.mxu1 %v4999_v31 }
 0x2b4   : > { %4455 = vmatmul.mubr.msk.f32.vlgmr.msra.gmra.mrb[8].mxu1 %vm1014_vm3, %v5235_v60 }
 0x2b5   : > { %4464 = vmatprep.mubr.msk.f32.mxu1 %vm4998_vm2, %v4999_v31 }
 0x2b8   : > { %v1168_v3 = vpop.permute.xlu1 %1167 }
 0x2b9   : > { %4458 = vmatpush3.xpose.msk.msra.mxu0 %vm1014_vm3, %v1168_v3 }
 0x2ba   : > { %4467 = vmatprep.subr.mxu0 %v4999_v31 }
 0x2bc   : > { %4460 = vmatmul.mubr.msk.f32.vlgmr.msra.gmra.mrb[0].mxu0 %vm1014_vm3, %v5238_v63 }
 0x2bd   : > { %4469 = vmatprep.mubr.msk.f32.mxu0 %vm4998_vm2, %v4999_v31 }
 0x37f   : > { %v1085_v7 = vpop.f32.mrb[6].mxu1 }
 0x380   : > { %v1243_v9 = vmul.f32 0.35355338, %v1085_v7  ;;  %v4451_v10 = vpop.f32.mrb[7].mxu1 }
 0x382   : > { %v1253_v11 = vsel %vm5259_vm4, %v1243_v9, -1e+30 }
 0x383   : > { %v1256_v12 = vsel %vm1014_vm3, %v1253_v11, -inf }
 0x384   : > { %1257 = vmax.xlane.f32.xlu0 %v1256_v12 }
 0x387   : > { %v1162_v13 = vpop.f32.mrb[8].mxu1 }
 0x388   : > { %v1244_v14 = vmul.f32 0.35355338, %v1162_v13  ;;  %v4456_v15 = vpop.f32.mrb[9].mxu1 }
 0x38a   : > { %v1254_v16 = vsel %vm5259_vm4, %v1244_v14, -1e+30 }
 0x38b   : > { %v1259_v17 = vsel %vm1014_vm3, %v1254_v16, -inf }
 0x38c   : > { %1260 = vmax.xlane.f32.xlu1 %v1259_v17 }
 0x38f   : > { %v1239_v18 = vpop.f32.mrb[0].mxu0 }
 0x390   : > { %v1245_v19 = vmul.f32 0.35355338, %v1239_v18  ;;  %v4461_v20 = vpop.f32.mrb[1].mxu0 }
 0x392   : > { %v1255_v21 = vsel %vm5259_vm4, %v1245_v19, -1e+30 }
 0x393   : > { %v1262_v22 = vsel %vm1014_vm3, %v1255_v21, -inf }
 0x394   : > { %1263 = vmax.xlane.f32.xlu0 %v1262_v22 }
 0x39d   : > { %1365 = vrot.lane.b32.xlu1 %v5235_v60, %s5001_s15 }
 0x3aa   : > { %1519 = vrot.lane.b32.xlu0 %v5232_v57, %s5002_s16 }
 0x411   : > { %v1258_v23 = vpop.xlane.xlu0 %1257 }
 0x412   : > { %v1265_v24 = vsub.f32 %v1253_v11, %v1258_v23 }
 0x414   : > { %v1268_v25 = vmul.f32 1.442695, %v1265_v24 }
 0x416   : > { %4916 = vpow2.f32 %v1268_v25 }
 0x419   : > { %v1261_v26 = vpop.xlane.xlu1 %1260 }
 0x41a   : > { %v1266_v28 = vsub.f32 %v1254_v16, %v1261_v26 }
 0x41c   : > { %v1270_v29 = vmul.f32 1.442695, %v1266_v28 }
 0x41d   : > { %v1366_v30 = vpop.permute.xlu1 %1365 }
 0x41e   : > { %4918 = vpow2.f32 %v1270_v29  ;;  %4468 = vmatpush3.msra.mxu0 %v1366_v30 }
 0x41f   : > { %4477 = vmatprep.subr.mxu0 %v4999_v31 }
 0x420   : > { %v4917_v32 = vpop.eup %4916 }
 0x421   : > { %v1264_v33 = vpop.xlane.xlu0 %1263  ;;  %v1274_v34 = vsel %vm1014_vm3, %v4917_v32, 0.0 }
 0x422   : > { %v1267_v35 = vsub.f32 %v1255_v21, %v1264_v33  ;;  %1275 = vadd.xlane.f32.xlu0 %v1274_v34 }
 0x424   : > { %v1272_v36 = vmul.f32 1.442695, %v1267_v35 }
 0x425   : > { %v1520_v41 = vpop.permute.xlu0 %1519 }
 0x426   : > { %4920 = vpow2.f32 %v1272_v36 }
 0x428   : > { %v4919_v37 = vpop.eup %4918 }
 0x429   : > { %v1277_v38 = vsel %vm1014_vm3, %v4919_v37, 0.0 }
 0x42a   : > { %1278 = vadd.xlane.f32.xlu0 %v1277_v38 }
 0x430   : > { %v4921_v39 = vpop.eup %4920 }
 0x431   : > { %v1280_v40 = vsel %vm1014_vm3, %v4921_v39, 0.0 }
 0x432   : > { %1281 = vadd.xlane.f32.xlu1 %v1280_v40 }
 0x440   : > { %1517 = vrot.lane.b32.xlu0 %v5232_v57, %s5003_s27 }
 0x443   : > { %1595 = vrot.lane.b32.xlu1 %v5235_v60, %s5003_s27 }
 0x444   : > { %1675 = vrot.lane.b32.xlu0 %v5238_v63, %s5002_s16 }
 0x448   : > { %1673 = vrot.lane.b32.xlu0 %v5238_v63, %s5003_s27 }
 0x44c   : > { %1289 = vrot.lane.b32.xlu0 %v5232_v57, %s5001_s15 }
 0x450   : > { %1441 = vrot.lane.b32.xlu0 %v5238_v63, %s5001_s15  ;;  %s5012_s15 = smov 16  }
 0x454   : > { %1597 = vrot.lane.b32.xlu0 %v5235_v60, %s5002_s16  ;;  %s5013_s16 = smov 24  }
 0x4af   : > { %v1276_v42 = vpop.xlane.xlu0 %1275 }
 0x4b7   : > { %v1279_v43 = vpop.xlane.xlu0 %1278 }
 0x4b8   : > { %4922 = vrcp.f32 %v1279_v43 }
 0x4b9   : > { %4924 = vrcp.f32 %v1276_v42 }
 0x4bb   : > { %v1518_v44 = vpop.permute.xlu0 %1517 }
 0x4bf   : > { %v1676_v45 = vpop.permute.xlu0 %1675  ;;  %v1282_v46 = vpop.xlane.xlu1 %1281 }
 0x4c0   : > { %4926 = vrcp.f32 %v1282_v46 }
 0x4c2   : > { %v4923_v47 = vpop.eup %4922 }
 0x4c3   : > { %v1286_v48 = vmul.f32 %v4923_v47, %v4919_v37  ;;  %v1674_v49 = vpop.permute.xlu0 %1673  ;;  %v4925_v50 = vpop.eup %4924 }
 0x4c4   : > { %v1284_v51 = vmul.f32 %v4925_v50, %v4917_v32  ;;  %v1596_v58 = vpop.permute.xlu1 %1595 }
 0x4c5   : > { %4470 = vmatmul.mubr.msk.f32.vlgmr.msra.gmra.mrb[2].mxu0 %vm1014_vm3, %v1286_v48 }
 0x4c6   : > { %4478 = vmatpush3.xpose.msk.msra.mxu0 %vm1014_vm3, %v1520_v41  ;;  %4479 = vmatprep.mubr.msk.f32.mxu0 %vm4998_vm2, %v4999_v31 }
 0x4c7   : > { %v1290_v52 = vpop.permute.xlu0 %1289  ;;  %4487 = vmatprep.subr.mxu0 %v4999_v31 }
 0x4c8   : > { %4463 = vmatpush3.msra.mxu1 %v1290_v52 }
 0x4c9   : > { %4465 = vmatmul.mubr.msk.f32.vlgmr.msra.gmra.mrb[10].mxu1 %vm1014_vm3, %v1284_v51  ;;  %4480 = vmatmul.mubr.msk.f32.vlgmr.msra.gmra.mrb[4].mxu0 %vm1014_vm3, %v1518_v44 }
 0x4ca   : > { %v4927_v53 = vpop.eup %4926  ;;  %4488 = vmatpush3.xpose.msk.msra.mxu0 %vm1014_vm3, %v1676_v45  ;;  %4472 = vmatprep.subr.mxu1 %v4999_v31 }
 0x4cb   : > { %v1288_v54 = vmul.f32 %v4927_v53, %v4921_v39  ;;  %v1442_v55 = vpop.permute.xlu0 %1441  ;;  %4474 = vmatprep.mubr.msk.f32.mxu1 %vm4998_vm2, %v4999_v31  ;;  %4489 = vmatprep.mubr.msk.f32.mxu0 %vm4998_vm2, %v4999_v31 }
 0x4cc   : > { %4473 = vmatpush3.msra.mxu1 %v1442_v55  ;;  %4497 = vmatprep.subr.mxu0 %v4999_v31 }
 0x4cd   : > { %4475 = vmatmul.mubr.msk.f32.vlgmr.msra.gmra.mrb[12].mxu1 %vm1014_vm3, %v1288_v54  ;;  %4490 = vmatmul.mubr.msk.f32.vlgmr.msra.gmra.mrb[6].mxu0 %vm1014_vm3, %v1674_v49 }
 0x4ce   : > { %4482 = vmatprep.subr.mxu1 %v4999_v31  ;;  %4484 = vmatprep.mubr.msk.f32.mxu1 %vm4998_vm2, %v4999_v31 }
 0x4cf   : > { %4499 = vmatprep.mubr.msk.f32.mxu0 %vm4998_vm2, %v4999_v31  ;;  %v1598_v56 = vpop.permute.xlu0 %1597 }
 0x4d3   : > { %4483 = vmatpush3.xpose.msk.msra.mxu1 %vm1014_vm3, %v1598_v56 }
 0x4d4   : > { %4492 = vmatprep.subr.mxu1 %v4999_v31 }
 0x4d6   : > { %4485 = vmatmul.mubr.msk.f32.vlgmr.msra.gmra.mrb[14].mxu1 %vm1014_vm3, %v1596_v58 }
 0x4d7   : > { %4494 = vmatprep.mubr.msk.f32.mxu1 %vm4998_vm2, %v4999_v31 }
 0x598   : > { %v5317_v59 = vpop.f32.mrb[2].mxu0 }
 0x599   : > { %v4471_v61 = vpop.f32.mrb[3].mxu0 }
 0x59c   : > { %v5319_v62 = vpop.f32.mrb[10].mxu1  ;;  %v1591_v0 = vpop.f32.mrb[4].mxu0 }
 0x59d   : > { %v1751_v1 = vmul.f32 0.35355338, %v1591_v0  ;;  %v4466_v2 = vpop.f32.mrb[11].mxu1  ;;  %v4481_v3 = vpop.f32.mrb[5].mxu0 }
 0x59f   : > { %v1754_v4 = vsel %vm5259_vm4, %v1751_v1, -1e+30 }
 0x5a0   : > { %v5323_v5 = vpop.f32.mrb[12].mxu1  ;;  %v1747_v6 = vpop.f32.mrb[6].mxu0  ;;  %v1757_v7 = vsel %vm1014_vm3, %v1754_v4, -inf }
 0x5a1   : > { %v1753_v9 = vmul.f32 0.35355338, %v1747_v6  ;;  %1758 = vmax.xlane.f32.xlu0 %v1757_v7  ;;  %v4476_v10 = vpop.f32.mrb[13].mxu1  ;;  %v4491_v11 = vpop.f32.mrb[7].mxu0 }
 0x5a3   : > { %v1756_v12 = vsel %vm5259_vm4, %v1753_v9, -1e+30 }
 0x5a4   : > { %v1763_v13 = vsel %vm1014_vm3, %v1756_v12, -inf }
 0x5a5   : > { %1764 = vmax.xlane.f32.xlu1 %v1763_v13 }
 0x5a9   : > { %v1669_v14 = vpop.f32.mrb[14].mxu1 }
 0x5aa   : > { %v1752_v15 = vmul.f32 0.35355338, %v1669_v14  ;;  %v4486_v16 = vpop.f32.mrb[15].mxu1 }
 0x5ac   : > { %v1755_v17 = vsel %vm5259_vm4, %v1752_v15, -1e+30 }
 0x5ad   : > { %v1760_v18 = vsel %vm1014_vm3, %v1755_v17, -inf }
 0x5ae   : > { %1761 = vmax.xlane.f32.xlu0 %v1760_v18 }
 0x5b6   : > { %1942 = vrot.lane.b32.xlu1 %v5238_v63, %s5004_s29 }
 0x5ba   : > { %2098 = vrot.lane.b32.xlu1 %v5235_v60, %s5005_s18 }
 0x5be   : > { %2096 = vrot.lane.b32.xlu1 %v5235_v60, %s5006_s30 }
 0x5c2   : > { %1866 = vrot.lane.b32.xlu1 %v5235_v60, %s5004_s29 }
 0x5c6   : > { %2020 = vrot.lane.b32.xlu1 %v5232_v57, %s5005_s18 }
 0x5ca   : > { %2018 = vrot.lane.b32.xlu1 %v5232_v57, %s5006_s30 }
 0x5ce   : > { %2176 = vrot.lane.b32.xlu1 %v5238_v63, %s5005_s18 }
 0x5d2   : > { %2174 = vrot.lane.b32.xlu1 %v5238_v63, %s5006_s30 }
 0x62e   : > { %v1759_v19 = vpop.xlane.xlu0 %1758 }
 0x62f   : > { %v1766_v20 = vsub.f32 %v1754_v4, %v1759_v19 }
 0x631   : > { %v1769_v21 = vmul.f32 1.442695, %v1766_v20 }
 0x632   : > { %v1765_v22 = vpop.xlane.xlu1 %1764 }
 0x633   : > { %4928 = vpow2.f32 %v1769_v21  ;;  %v1768_v23 = vsub.f32 %v1756_v12, %v1765_v22 }
 0x635   : > { %v1773_v24 = vmul.f32 1.442695, %v1768_v23 }
 0x636   : > { %v1943_v25 = vpop.permute.xlu1 %1942 }
 0x637   : > { %4930 = vpow2.f32 %v1773_v24 }
 0x63a   : > { %v2099_v26 = vpop.permute.xlu1 %2098 }
 0x63b   : > { %v1762_v35 = vpop.xlane.xlu0 %1761 }
 0x63c   : > { %v1767_v36 = vsub.f32 %v1755_v17, %v1762_v35 }
 0x63d   : > { %v4929_v28 = vpop.eup %4928 }
 0x63e   : > { %v2097_v29 = vpop.permute.xlu1 %2096  ;;  %v1775_v30 = vsel %vm1014_vm3, %v4929_v28, 0.0  ;;  %v1771_v37 = vmul.f32 1.442695, %v1767_v36 }
 0x63f   : > { %1776 = vadd.xlane.f32.xlu0 %v1775_v30 }
 0x640   : > { %4932 = vpow2.f32 %v1771_v37 }
 0x641   : > { %v4931_v32 = vpop.eup %4930 }
 0x642   : > { %v1867_v33 = vpop.permute.xlu1 %1866  ;;  %v1781_v34 = vsel %vm1014_vm3, %v4931_v32, 0.0 }
 0x643   : > { %4498 = vmatpush3.msra.mxu0 %v1867_v33  ;;  %1782 = vadd.xlane.f32.xlu0 %v1781_v34 }
 0x644   : > { %4507 = vmatprep.subr.mxu0 %v4999_v31 }
 0x646   : > { %v2021_v48 = vpop.permute.xlu1 %2020 }
 0x64a   : > { %v4933_v38 = vpop.eup %4932  ;;  %v2019_v49 = vpop.permute.xlu1 %2018 }
 0x64b   : > { %v1778_v39 = vsel %vm1014_vm3, %v4933_v38, 0.0 }
 0x64e   : > { %v2177_v52 = vpop.permute.xlu1 %2176 }
 0x652   : > { %v2175_v53 = vpop.permute.xlu1 %2174 }
 0x659   : > { %1790 = vrot.lane.b32.xlu0 %v5232_v57, %s5004_s29  ;;  %s5709_s29 = scalar_lea.vmem %s5677_s7, %s5120_s26 }
 0x678   : > { %1779 = vadd.xlane.f32.xlu0 %v1778_v39 }
 0x6cc   : > { %v1777_v40 = vpop.xlane.xlu0 %1776 }
 0x6cd   : > { %4934 = vrcp.f32 %v1777_v40 }
 0x6d0   : > { %v1783_v41 = vpop.xlane.xlu0 %1782 }
 0x6d1   : > { %4936 = vrcp.f32 %v1783_v41 }
 0x6d4   : > { %v1791_v42 = vpop.permute.xlu0 %1790 }
 0x6d5   : > { %4493 = vmatpush3.msra.mxu1 %v1791_v42 }
 0x6d6   : > { %4502 = vmatprep.subr.mxu1 %v4999_v31 }
 0x6d7   : > { %v4935_v43 = vpop.eup %4934 }
 0x6d8   : > { %v1785_v44 = vmul.f32 %v4935_v43, %v4929_v28 }
 0x6da   : > { %4495 = vmatmul.mubr.msk.f32.vlgmr.msra.gmra.mrb[16].mxu1 %vm1014_vm3, %v1785_v44 }
 0x6db   : > { %v4937_v45 = vpop.eup %4936  ;;  %4503 = vmatpush3.msra.mxu1 %v1943_v25  ;;  %4504 = vmatprep.mubr.msk.f32.mxu1 %vm4998_vm2, %v4999_v31 }
 0x6dc   : > { %v1789_v46 = vmul.f32 %v4937_v45, %v4931_v32  ;;  %4512 = vmatprep.subr.mxu1 %v4999_v31 }
 0x6de   : > { %4505 = vmatmul.mubr.msk.f32.vlgmr.msra.gmra.mrb[18].mxu1 %vm1014_vm3, %v1789_v46 }
 0x6df   : > { %4514 = vmatprep.mubr.msk.f32.mxu1 %vm4998_vm2, %v4999_v31 }
 0x6e2   : > { %4513 = vmatpush3.xpose.msk.msra.mxu1 %vm1014_vm3, %v2099_v26 }
 0x6e3   : > { %4522 = vmatprep.subr.mxu1 %v4999_v31 }
 0x6e5   : > { %4515 = vmatmul.mubr.msk.f32.vlgmr.msra.gmra.mrb[20].mxu1 %vm1014_vm3, %v2097_v29 }
 0x6e6   : > { %4524 = vmatprep.mubr.msk.f32.mxu1 %vm4998_vm2, %v4999_v31 }
 0x705   : > { %v1780_v47 = vpop.xlane.xlu0 %1779 }
 0x706   : > { %4938 = vrcp.f32 %v1780_v47 }
 0x710   : > { %v4939_v50 = vpop.eup %4938 }
 0x711   : > { %v1787_v51 = vmul.f32 %v4939_v50, %v4933_v38 }
 0x713   : > { %4500 = vmatmul.mubr.msk.f32.vlgmr.msra.gmra.mrb[8].mxu0 %vm1014_vm3, %v1787_v51 }
 0x714   : > { %4508 = vmatpush3.xpose.msk.msra.mxu0 %vm1014_vm3, %v2021_v48  ;;  %4509 = vmatprep.mubr.msk.f32.mxu0 %vm4998_vm2, %v4999_v31 }
 0x715   : > { %4517 = vmatprep.subr.mxu0 %v4999_v31 }
 0x717   : > { %4510 = vmatmul.mubr.msk.f32.vlgmr.msra.gmra.mrb[10].mxu0 %vm1014_vm3, %v2019_v49 }
 0x718   : > { %4518 = vmatpush3.xpose.msk.msra.mxu0 %vm1014_vm3, %v2177_v52  ;;  %4519 = vmatprep.mubr.msk.f32.mxu0 %vm4998_vm2, %v4999_v31 }
 0x719   : > { %4527 = vmatprep.subr.mxu0 %v4999_v31 }
 0x71b   : > { %4520 = vmatmul.mubr.msk.f32.vlgmr.msra.gmra.mrb[12].mxu0 %vm1014_vm3, %v2175_v53 }
 0x71c   : > { %4529 = vmatprep.mubr.msk.f32.mxu0 %vm4998_vm2, %v4999_v31 }
 0x7ad   : > { %v5374_v54 = vpop.f32.mrb[16].mxu1 }
 0x7ae   : > { %v4496_v55 = vpop.f32.mrb[17].mxu1 }
 0x7b1   : > { %v5376_v56 = vpop.f32.mrb[18].mxu1 }
 0x7b2   : > { %v4506_v58 = vpop.f32.mrb[19].mxu1 }
 0x7b8   : > { %v2170_v61 = vpop.f32.mrb[20].mxu1 }
 0x7b9   : > { %v2253_v0 = vmul.f32 0.35355338, %v2170_v61  ;;  %v4516_v1 = vpop.f32.mrb[21].mxu1 }
 0x7bb   : > { %v2256_v2 = vsel %vm5259_vm4, %v2253_v0, -1e+30 }
 0x7bc   : > { %v2261_v3 = vsel %vm1014_vm3, %v2256_v2, -inf }
 0x7bd   : > { %2262 = vmax.xlane.f32.xlu0 %v2261_v3 }
 0x7d3   : > { %2367 = vrot.lane.b32.xlu0 %v5235_v60, %s5007_s20 }
 0x7e6   : > { %v5383_v4 = vpop.f32.mrb[8].mxu0 }
 0x7e7   : > { %v4501_v6 = vpop.f32.mrb[9].mxu0 }
 0x7ea   : > { %v2092_v7 = vpop.f32.mrb[10].mxu0 }
 0x7eb   : > { %v2252_v9 = vmul.f32 0.35355338, %v2092_v7  ;;  %v4511_v10 = vpop.f32.mrb[11].mxu0 }
 0x7ed   : > { %v2255_v11 = vsel %vm5259_vm4, %v2252_v9, -1e+30 }
 0x7ee   : > { %v2248_v12 = vpop.f32.mrb[12].mxu0  ;;  %v2258_v13 = vsel %vm1014_vm3, %v2255_v11, -inf }
 0x7ef   : > { %v2254_v14 = vmul.f32 0.35355338, %v2248_v12  ;;  %2259 = vmax.xlane.f32.xlu1 %v2258_v13  ;;  %v4521_v15 = vpop.f32.mrb[13].mxu0 }
 0x7f1   : > { %v2257_v16 = vsel %vm5259_vm4, %v2254_v14, -1e+30 }
 0x7f2   : > { %v2264_v17 = vsel %vm1014_vm3, %v2257_v16, -inf }
 0x7f3   : > { %2265 = vmax.xlane.f32.xlu0 %v2264_v17 }
 0x800   : > { %2521 = vrot.lane.b32.xlu1 %v5232_v57, %s5008_s19 }
 0x809   : > { %2519 = vrot.lane.b32.xlu0 %v5232_v57, %s5009_s23 }
 0x84a   : > { %v2263_v18 = vpop.xlane.xlu0 %2262 }
 0x84b   : > { %v2268_v19 = vsub.f32 %v2256_v2, %v2263_v18 }
 0x84d   : > { %v2272_v20 = vmul.f32 1.442695, %v2268_v19 }
 0x84e   : > { %v2368_v21 = vpop.permute.xlu0 %2367 }
 0x84f   : > { %4940 = vpow2.f32 %v2272_v20  ;;  %4528 = vmatpush3.msra.mxu0 %v2368_v21 }
 0x850   : > { %4537 = vmatprep.subr.mxu0 %v4999_v31 }
 0x859   : > { %v4941_v22 = vpop.eup %4940 }
 0x85a   : > { %v2279_v23 = vsel %vm1014_vm3, %v4941_v22, 0.0 }
 0x85b   : > { %2280 = vadd.xlane.f32.xlu0 %v2279_v23 }
 0x871   : > { %2291 = vrot.lane.b32.xlu0 %v5232_v57, %s5007_s20 }
 0x87c   : > { %v2260_v24 = vpop.xlane.xlu1 %2259 }
 0x87d   : > { %v2267_v25 = vsub.f32 %v2255_v11, %v2260_v24 }
 0x87f   : > { %v2270_v26 = vmul.f32 1.442695, %v2267_v25 }
 0x880   : > { %v2266_v28 = vpop.xlane.xlu0 %2265  ;;  %v2522_v41 = vpop.permute.xlu1 %2521 }
 0x881   : > { %v2269_v29 = vsub.f32 %v2257_v16, %v2266_v28  ;;  %4942 = vpow2.f32 %v2270_v26 }
 0x883   : > { %v2274_v30 = vmul.f32 1.442695, %v2269_v29 }
 0x884   : > { %v2520_v36 = vpop.permute.xlu0 %2519 }
 0x885   : > { %4944 = vpow2.f32 %v2274_v30 }
 0x88b   : > { %v4943_v32 = vpop.eup %4942 }
 0x88c   : > { %v2276_v34 = vsel %vm1014_vm3, %v4943_v32, 0.0 }
 0x88f   : > { %v4945_v33 = vpop.eup %4944 }
 0x890   : > { %2277 = vadd.xlane.f32.xlu0 %v2276_v34  ;;  %v2282_v35 = vsel %vm1014_vm3, %v4945_v33, 0.0 }
 0x891   : > { %2283 = vadd.xlane.f32.xlu1 %v2282_v35 }
 0x8a2   : > { %2443 = vrot.lane.b32.xlu1 %v5238_v63, %s5007_s20 }
 0x8a6   : > { %2599 = vrot.lane.b32.xlu0 %v5235_v60, %s5008_s19 }
 0x8aa   : > { %2677 = vrot.lane.b32.xlu0 %v5238_v63, %s5008_s19  ;;  %s5710_s19 = sld [smem:[#allocation5_spill]] (!%p4255_p5) }
 0x8ae   : > { %2597 = vrot.lane.b32.xlu0 %v5235_v60, %s5009_s23 }
 0x8b2   : > { %2675 = vrot.lane.b32.xlu0 %v5238_v63, %s5009_s23 }
 0x8e8   : > { %v2281_v37 = vpop.xlane.xlu0 %2280 }
 0x8e9   : > { %4946 = vrcp.f32 %v2281_v37 }
 0x8ec   : > { %v2292_v38 = vpop.permute.xlu0 %2291 }
 0x8ed   : > { %4523 = vmatpush3.msra.mxu1 %v2292_v38 }
 0x8ee   : > { %4532 = vmatprep.subr.mxu1 %v4999_v31 }
 0x8f3   : > { %v4947_v39 = vpop.eup %4946 }
 0x8f4   : > { %v2288_v40 = vmul.f32 %v4947_v39, %v4941_v22 }
 0x8f6   : > { %4530 = vmatmul.mubr.msk.f32.vlgmr.msra.gmra.mrb[14].mxu0 %vm1014_vm3, %v2288_v40 }
 0x8f7   : > { %4538 = vmatpush3.xpose.msk.msra.mxu0 %vm1014_vm3, %v2522_v41  ;;  %4539 = vmatprep.mubr.msk.f32.mxu0 %vm4998_vm2, %v4999_v31 }
 0x8f8   : > { %4547 = vmatprep.subr.mxu0 %v4999_v31 }
 0x8fa   : > { %4540 = vmatmul.mubr.msk.f32.vlgmr.msra.gmra.mrb[16].mxu0 %vm1014_vm3, %v2520_v36 }
 0x8fb   : > { %4549 = vmatprep.mubr.msk.f32.mxu0 %vm4998_vm2, %v4999_v31 }
 0x91d   : > { %v2278_v42 = vpop.xlane.xlu0 %2277 }
 0x91e   : > { %4948 = vrcp.f32 %v2278_v42  ;;  %v2284_v43 = vpop.xlane.xlu1 %2283 }
 0x91f   : > { %4950 = vrcp.f32 %v2284_v43  ;;  %v3067_v43 = vld [vmem:[%s5143_s17] sm:$0xff] }
 0x921   : > { %v2600_v44 = vpop.permute.xlu0 %2599 }
 0x922   : > { %v2444_v50 = vpop.permute.xlu1 %2443 }
 0x925   : > { %v2678_v45 = vpop.permute.xlu0 %2677 }
 0x926   : > { %4548 = vmatpush3.xpose.msk.msra.mxu0 %vm1014_vm3, %v2678_v45  ;;  %v3069_v45 = vld [vmem:[%s5143_s17 + $0x10] sm:$0xff] }
 0x927   : > { %4557 = vmatprep.subr.mxu0 %v4999_v31 }
 0x928   : > { %v4949_v46 = vpop.eup %4948 }
 0x929   : > { %v2286_v47 = vmul.f32 %v4949_v46, %v4943_v32  ;;  %v2598_v48 = vpop.permute.xlu0 %2597  ;;  %v4951_v49 = vpop.eup %4950 }
 0x92a   : > { %v2290_v51 = vmul.f32 %v4951_v49, %v4945_v33 }
 0x92b   : > { %4525 = vmatmul.mubr.msk.f32.vlgmr.msra.gmra.mrb[22].mxu1 %vm1014_vm3, %v2286_v47  ;;  %v3070_v47 = vld [vmem:[%s5143_s17 + $0x18] sm:$0xff] }
 0x92c   : > { %4533 = vmatpush3.msra.mxu1 %v2444_v50  ;;  %4534 = vmatprep.mubr.msk.f32.mxu1 %vm4998_vm2, %v4999_v31 }
 0x92d   : > { %v2676_v52 = vpop.permute.xlu0 %2675  ;;  %4542 = vmatprep.subr.mxu1 %v4999_v31 }
 0x92e   : > { %4550 = vmatmul.mubr.msk.f32.vlgmr.msra.gmra.mrb[18].mxu0 %vm1014_vm3, %v2676_v52 }
 0x92f   : > { %4535 = vmatmul.mubr.msk.f32.vlgmr.msra.gmra.mrb[24].mxu1 %vm1014_vm3, %v2290_v51  ;;  %4559 = vmatprep.mubr.msk.f32.mxu0 %vm4998_vm2, %v4999_v31 }
 0x930   : > { %4544 = vmatprep.mubr.msk.f32.mxu1 %vm4998_vm2, %v4999_v31 }
 0x933   : > { %4543 = vmatpush3.xpose.msk.msra.mxu1 %vm1014_vm3, %v2600_v44  ;;  %v3068_v44 = vld [vmem:[%s5143_s17 + $0x8] sm:$0xff]  ;;  %s5711_s17 = sld [smem:[#allocation10_spill]] (!%p4255_p5) }
 0x934   : > { %4552 = vmatprep.subr.mxu1 %v4999_v31  ;;  %v4768_v46 = vpack.c.bf16 %v3068_v44, %v3067_v43 }
 0x936   : > { %4545 = vmatmul.mubr.msk.f32.vlgmr.msra.gmra.mrb[26].mxu1 %vm1014_vm3, %v2598_v48  ;;  %v4771_v48 = vpack.c.bf16 %v3070_v47, %v3069_v45 }
 0x937   : > { %4554 = vmatprep.mubr.msk.f32.mxu1 %vm4998_vm2, %v4999_v31 }
 0x9c9   : > { %v2439_v53 = vpop.f32.mrb[14].mxu0 }
 0x9ca   : > { %v4531_v55 = vpop.f32.mrb[15].mxu0 }
 0x9cd   : > { %v2593_v58 = vpop.f32.mrb[16].mxu0 }
 0x9ce   : > { %v2753_v61 = vmul.f32 0.35355338, %v2593_v58  ;;  %v4541_v0 = vpop.f32.mrb[17].mxu0 }
 0x9d0   : > { %v2756_v1 = vsel %vm5259_vm4, %v2753_v61, -1e+30 }
 0x9d1   : > { %v2759_v2 = vsel %vm1014_vm3, %v2756_v1, -inf }
 0x9d2   : > { %2760 = vmax.xlane.f32.xlu0 %v2759_v2 }
 0x9fe   : > { %v2363_v3 = vpop.f32.mrb[22].mxu1 }
 0x9ff   : > { %v4526_v6 = vpop.f32.mrb[23].mxu1 }
 0xa01   : > { %v2749_v7 = vpop.f32.mrb[18].mxu0 }
 0xa02   : > { %v2755_v9 = vmul.f32 0.35355338, %v2749_v7  ;;  %v5440_v10 = vpop.f32.mrb[24].mxu1  ;;  %v4551_v11 = vpop.f32.mrb[19].mxu0 }
 0xa03   : > { %v4536_v12 = vpop.f32.mrb[25].mxu1 }
 0xa04   : > { %v2758_v13 = vsel %vm5259_vm4, %v2755_v9, -1e+30 }
 0xa05   : > { %v2765_v14 = vsel %vm1014_vm3, %v2758_v13, -inf }
 0xa06   : > { %2766 = vmax.xlane.f32.xlu0 %v2765_v14 }
 0xa09   : > { %v2671_v15 = vpop.f32.mrb[26].mxu1 }
 0xa0a   : > { %v2754_v16 = vmul.f32 0.35355338, %v2671_v15  ;;  %v4546_v17 = vpop.f32.mrb[27].mxu1 }
 0xa0c   : > { %v2757_v18 = vsel %vm5259_vm4, %v2754_v16, -1e+30 }
 0xa0d   : > { %v2762_v19 = vsel %vm1014_vm3, %v2757_v18, -inf }
 0xa0e   : > { %2763 = vmax.xlane.f32.xlu1 %v2762_v19 }
 0xa1f   : > { %2792 = vrot.lane.b32.xlu1 %v5232_v57, %s5010_s24 }
 0xa23   : > { %2944 = vrot.lane.b32.xlu1 %v5238_v63, %s5010_s24 }
 0xa27   : > { %3023 = vrot.lane.b32.xlu1 %v5374_v54, %s5011_s28 }
 0xa2b   : > { %3035 = vrot.lane.b32.xlu1 %v2363_v3, %s5012_s15 }
 0xa5f   : > { %v2761_v20 = vpop.xlane.xlu0 %2760 }
 0xa60   : > { %v2768_v8 = vsub.f32 %v2756_v1, %v2761_v20  ;;  %v4982_v20 = vld [vmem:[#allocation2] sm:$0xff] }
 0xa62   : > { %v2771_v21 = vmul.f32 1.442695, %v2768_v8 }
 0xa64   : > { %4952 = vpow2.f32 %v2771_v21 }
 0xa6e   : > { %v4953_v22 = vpop.eup %4952 }
 0xa6f   : > { %v2777_v23 = vsel %vm1014_vm3, %v4953_v22, 0.0 }
 0xa70   : > { %2778 = vadd.xlane.f32.xlu0 %v2777_v23 }
 0xa93   : > { %v2767_v24 = vpop.xlane.xlu0 %2766 }
 0xa94   : > { %v2770_v57 = vsub.f32 %v2758_v13, %v2767_v24  ;;  %v4983_v24 = vld [vmem:[#allocation2 + $0x10] sm:$0xff] }
 0xa96   : > { %v2775_v25 = vmul.f32 1.442695, %v2770_v57 }
 0xa98   : > { %4954 = vpow2.f32 %v2775_v25 }
 0xa9b   : > { %v2764_v63 = vpop.xlane.xlu1 %2763 }
 0xa9c   : > { %v2769_v26 = vsub.f32 %v2757_v18, %v2764_v63 }
 0xa9e   : > { %v2773_v28 = vmul.f32 1.442695, %v2769_v26 }
 0xa9f   : > { %v2793_v29 = vpop.permute.xlu1 %2792 }
 0xaa0   : > { %4956 = vpow2.f32 %v2773_v28  ;;  %4553 = vmatpush3.msra.mxu1 %v2793_v29  ;;  %v4984_v29 = vld [vmem:[#allocation2 + $0x8] sm:$0xff] }
 0xaa1   : > { %4562 = vmatprep.subr.mxu1 %v4999_v31 }
 0xaa2   : > { %v4955_v54 = vpop.eup %4954 }
 0xaa3   : > { %v2783_v30 = vsel %vm1014_vm3, %v4955_v54, 0.0  ;;  %v2945_v37 = vpop.permute.xlu1 %2944 }
 0xaa4   : > { %2784 = vadd.xlane.f32.xlu0 %v2783_v30 }
 0xaa7   : > { %v3024_v58 = vpop.permute.xlu1 %3023 }
 0xaa8   : > { %v3056_v0 = vsel %vm1014_vm3, %v5319_v62, %v3024_v58  ;;  %v4245_v58 = vld [vmem:[%s686_s14] ss:$0 sm:$0xff] }
 0xaaa   : > { %v4957_v32 = vpop.eup %4956 }
 0xaab   : > { %v2780_v33 = vsel %vm1014_vm3, %v4957_v32, 0.0  ;;  %v3036_v61 = vpop.permute.xlu1 %3035 }
 0xaac   : > { %2781 = vadd.xlane.f32.xlu0 %v2780_v33  ;;  %v3060_v1 = vsel %vm3059_vm5, %v3056_v0, %v3036_v61  ;;  %v4246_v0 = vld [vmem:[%s689_s21] ss:$0 sm:$0xff] }
 0xac2   : > { %2868 = vrot.lane.b32.xlu0 %v5235_v60, %s5010_s24 }
 0xac6   : > { %3025 = vrot.lane.b32.xlu0 %v5383_v4, %s5011_s28 }
 0xaca   : > { %3037 = vrot.lane.b32.xlu0 %v2439_v53, %s5012_s15 }
 0xafd   : > { %v2779_v34 = vpop.xlane.xlu0 %2778 }
 0xafe   : > { %4958 = vrcp.f32 %v2779_v34 }
 0xb08   : > { %v4959_v35 = vpop.eup %4958 }
 0xb09   : > { %v2787_v36 = vmul.f32 %v4959_v35, %v4953_v22 }
 0xb0b   : > { %4555 = vmatmul.mubr.msk.f32.vlgmr.msra.gmra.mrb[28].mxu1 %vm1014_vm3, %v2787_v36 }
 0xb0c   : > { %4563 = vmatpush3.msra.mxu1 %v2945_v37  ;;  %4564 = vmatprep.mubr.msk.f32.mxu1 %vm4998_vm2, %v4999_v31  ;;  %v3359_v37 = vld [vmem:[%s5160_s4] sm:$0xff] }
 0xb0d   : > { %4773 = vmatprep.subr.bf16.mxu1 %v4997_v27 }
 0xb31   : > { %v2785_v60 = vpop.xlane.xlu0 %2784 }
 0xb32   : > { %4960 = vrcp.f32 %v2785_v60  ;;  %v3360_v60 = vld [vmem:[%s5160_s4 + $0x8] sm:$0xff] }
 0xb39   : > { %v2782_v4 = vpop.xlane.xlu0 %2781 }
 0xb3a   : > { %4962 = vrcp.f32 %v2782_v4  ;;  %v4786_v4 = vpack.c.bf16 %v3360_v60, %v3359_v37  ;;  %v3627_v60 = vld [vmem:[%s5170_s0 + $0x70] sm:$0xff] }
 0xb3c   : > { %v4961_v38 = vpop.eup %4960 }
 0xb3d   : > { %v2791_v39 = vmul.f32 %v4961_v38, %v4955_v54  ;;  %v2869_v40 = vpop.permute.xlu0 %2868  ;;  %v3361_v38 = vld [vmem:[%s5160_s4 + $0x10] sm:$0xff] }
 0xb3e   : > { %4558 = vmatpush3.msra.mxu0 %v2869_v40 }
 0xb3f   : > { %4565 = vmatmul.mubr.msk.f32.vlgmr.msra.gmra.mrb[30].mxu1 %vm1014_vm3, %v2791_v39  ;;  %4767 = vmatprep.subr.bf16.mxu0 %v4997_v27  ;;  %v3362_v39 = vld [vmem:[%s5160_s4 + $0x18] sm:$0xff] }
 0xb40   : > { %4586 = vmatprep.mubr.msk.f32.mxu1 %vm4998_vm2, %v4999_v31  ;;  %4775 = vmatpush3.bf16.msra.mxu1 %v4768_v46  ;;  %v4789_v40 = vpack.c.bf16 %v3362_v39, %v3361_v38  ;;  %v4247_v39 = vld [vmem:[%s697_s6] ss:$0 sm:$0xff]  ;;  %s5712_s6 = sld [smem:[#allocation8_spill]] (!%p4255_p5) }
 0xb41   : > { %4776 = vmatprep.subr.bf16.mxu1 %v4997_v27  ;;  %v3026_v62 = vpop.permute.xlu0 %3025 }
 0xb42   : > { %v3057_v13 = vsel %vm1014_vm3, %v5317_v59, %v3026_v62 }
 0xb44   : > { %v4963_v41 = vpop.eup %4962  ;;  %4778 = vmatpush3.bf16.msra.mxu1 %v4771_v48 }
 0xb45   : > { %v2789_v42 = vmul.f32 %v4963_v41, %v4957_v32  ;;  %4785 = vmatprep.subr.bf16.mxu1 %v4997_v27  ;;  %v3038_v12 = vpop.permute.xlu0 %3037 }
 0xb46   : > { %v3061_v14 = vsel %vm3059_vm5, %v3057_v13, %v3038_v12 }
 0xb47   : > { %4560 = vmatmul.mubr.msk.f32.vlgmr.msra.gmra.mrb[20].mxu0 %vm1014_vm3, %v2789_v42 }
 0xb48   : > { %4575 = vmatprep.mubr.msk.f32.mxu0 %vm4998_vm2, %v4999_v31  ;;  %4769 = vmatpush3.bf16.msra.mxu0 %v4768_v46 }
 0xb49   : > { %4770 = vmatprep.subr.bf16.mxu0 %v4997_v27 }
 0xb4c   : > { %4772 = vmatpush3.bf16.msra.mxu0 %v4771_v48 }
 0xb4d   : > { %4779 = vmatprep.subr.bf16.mxu0 %v4997_v27 }
 0xbde   : > { %v2864_v49 = vpop.f32.mrb[28].mxu1 }
 0xbdf   : > { %3047 = vrot.lane.b32.xlu1 %v2864_v49, %s5013_s16  ;;  %v4556_v50 = vpop.f32.mrb[29].mxu1 }
 0xbe3   : > { %3027 = vrot.lane.b32.xlu1 %v5376_v56, %s5011_s28  ;;  %s5714_s28 = sld [smem:[#allocation11_spill]] (!%p4255_p5) }
 0xbe7   : > { %3039 = vrot.lane.b32.xlu1 %v5440_v10, %s5012_s15 }
 0xc12   : > { %v3016_v51 = vpop.f32.mrb[30].mxu1 }
 0xc13   : > { %3051 = vrot.lane.b32.xlu1 %v3016_v51, %s5013_s16  ;;  %v4566_v52 = vpop.f32.mrb[31].mxu1 }
 0xc1a   : > { %v2940_v53 = vpop.f32.mrb[20].mxu0 }
 0xc1b   : > { %3049 = vrot.lane.b32.xlu0 %v2940_v53, %s5013_s16  ;;  %v4561_v55 = vpop.f32.mrb[21].mxu0 }
 0xc51   : > { %v3048_v2 = vpop.permute.xlu1 %3047 }
 0xc52   : > { %v3064_v56 = vsel %vm3063_vm6, %v3060_v1, %v3048_v2 }
 0xc53   : > { %4576 = vmatmul.mubr.msk.f32.vlgmr.msra.gmra.mrb[22].mxu0 %vm720_vm1, %v3064_v56 }
 0xc54   : > { %4781 = vmatpush3.bf16.msra.mxu0 %v4768_v46  ;;  %4597 = vmatprep.mubr.msk.f32.mxu0 %vm4998_vm2, %v4999_v31 }
 0xc55   : > { %4782 = vmatprep.subr.bf16.mxu0 %v4997_v27  ;;  %v3028_v3 = vpop.permute.xlu1 %3027 }
 0xc56   : > { %v3058_v7 = vsel %vm1014_vm3, %v5323_v5, %v3028_v3  ;;  %v4241_v5 = vld [vmem:[%s5709_s29] ss:$0 sm:$0xff] }
 0xc58   : > { %4784 = vmatpush3.bf16.msra.mxu0 %v4771_v48 }
 0xc59   : > { %4791 = vmatprep.subr.bf16.mxu0 %v4997_v27  ;;  %v3040_v6 = vpop.permute.xlu1 %3039 }
 0xc5a   : > { %v3062_v9 = vsel %vm3059_vm5, %v3058_v7, %v3040_v6 }
 0xc85   : > { %v3052_v10 = vpop.permute.xlu1 %3051 }
 0xc86   : > { %v3066_v11 = vsel %vm3063_vm6, %v3062_v9, %v3052_v10 }
 0xc87   : > { %4598 = vmatmul.mubr.msk.f32.vlgmr.msra.gmra.mrb[24].mxu0 %vm720_vm1, %v3066_v11 }
 0xc88   : > { %4619 = vmatprep.mubr.msk.f32.mxu0 %vm4998_vm2, %v4999_v31  ;;  %4793 = vmatpush3.bf16.msra.mxu0 %v4786_v4 }
 0xc89   : > { %4794 = vmatprep.subr.bf16.mxu0 %v4997_v27 }
 0xc8c   : > { %4796 = vmatpush3.bf16.msra.mxu0 %v4789_v40 }
 0xc8d   : > { %v3050_v15 = vpop.permute.xlu0 %3049  ;;  %4803 = vmatprep.subr.bf16.mxu0 %v4997_v27 }
 0xc8e   : > { %v3065_v16 = vsel %vm3063_vm6, %v3061_v14, %v3050_v15 }
 0xc8f   : > { %4587 = vmatmul.mubr.msk.f32.vlgmr.msra.gmra.mrb[32].mxu1 %vm720_vm1, %v3065_v16 }
 0xc90   : > { %4608 = vmatprep.mubr.msk.f32.mxu1 %vm4998_vm2, %v4999_v31  ;;  %4787 = vmatpush3.bf16.msra.mxu1 %v4786_v4 }
 0xc91   : > { %4788 = vmatprep.subr.bf16.mxu1 %v4997_v27 }
 0xc94   : > { %4790 = vmatpush3.bf16.msra.mxu1 %v4789_v40 }
 0xc95   : > { %4797 = vmatprep.subr.bf16.mxu1 %v4997_v27 }
 0xd26   : > { %v3147_v17 = vpop.f32.mrb[22].mxu0 }
 0xd27   : > { %v3148_v18 = vadd.f32 %v4241_v5, %v3147_v17  ;;  %v4577_v19 = vpop.f32.mrb[23].mxu0  ;;  %v3613_v17 = vld [vmem:[%s5170_s0] sm:$0xff] }
 0xd29   : > { %v5515_v59 = vadd.f32 %v4982_v20, %v3148_v18  ;;  %v3614_v18 = vld [vmem:[%s5170_s0 + $0x8] sm:$0xff]  ;;  %v3615_v20 = vld [vmem:[%s5170_s0 + $0x10] sm:$0xff] }
 0xd2a   : > { %v5564_v19 = vpack.c.bf16 %v3614_v18, %v3613_v17 }
 0xd2b   : > { %v3300_v8 = vsel %vm720_vm1, %v5515_v59, 0.0 }
 0xd2c   : > { %3301 = vadd.xlane.f32.xlu0 %v3300_v8  ;;  %v3616_v8 = vld [vmem:[%s5170_s0 + $0x18] sm:$0xff] }
 0xd5a   : > { %v3293_v21 = vpop.f32.mrb[24].mxu0 }
 0xd5b   : > { %v3294_v22 = vadd.f32 %v4241_v5, %v3293_v21  ;;  %v4599_v23 = vpop.f32.mrb[25].mxu0  ;;  %v4807_v21 = vpack.c.bf16 %v3616_v8, %v3615_v20  ;;  %v5014_v8 = vmov (!%p4255_p5), 0  }
 0xd5c   : > { %v3618_v23 = vld [vmem:[%s5170_s0 + $0x28] sm:$0xff]  ;;  %4986 = vset.pattern.permute.xlu1 (!%p4255_p5), %v5014_v8  ;;  %4985 = vset.pattern.permute.xlu0 (!%p4255_p5), %v5014_v8 }
 0xd5d   : > { %v5519_v57 = vadd.f32 %v4983_v24, %v3294_v22  ;;  %v3617_v22 = vld [vmem:[%s5170_s0 + $0x20] sm:$0xff] }
 0xd5e   : > { %v4810_v24 = vpack.c.bf16 %v3618_v23, %v3617_v22 }
 0xd5f   : > { %v3306_v25 = vsel %vm720_vm1, %v5519_v57, 0.0 }
 0xd60   : > { %3307 = vadd.xlane.f32.xlu0 %v3306_v25  ;;  %v3619_v25 = vld [vmem:[%s5170_s0 + $0x30] sm:$0xff] }
 0xd62   : > { %v3220_v63 = vpop.f32.mrb[32].mxu1 }
 0xd63   : > { %v3221_v26 = vadd.f32 %v4241_v5, %v3220_v63  ;;  %v4588_v28 = vpop.f32.mrb[33].mxu1  ;;  %v3620_v63 = vld [vmem:[%s5170_s0 + $0x38] sm:$0xff] }
 0xd64   : > { %v3621_v28 = vld [vmem:[%s5170_s0 + $0x40] sm:$0xff] }
 0xd65   : > { %v5523_v54 = vadd.f32 %v4984_v29, %v3221_v26  ;;  %v4813_v26 = vpack.c.bf16 %v3620_v63, %v3619_v25  ;;  %v3622_v29 = vld [vmem:[%s5170_s0 + $0x48] sm:$0xff] }
 0xd67   : > { %v3303_v30 = vsel %vm720_vm1, %v5523_v54, 0.0 }
 0xd68   : > { %3304 = vadd.xlane.f32.xlu1 %v3303_v30  ;;  %v4816_v30 = vpack.c.bf16 %v3622_v29, %v3621_v28 }
 0xdb9   : > { %v3302_v32 = vpop.xlane.xlu0 %3301 }
 0xdba   : > { %v3309_v33 = vmul.f32 0.03125, %v3302_v32  ;;  %v3623_v32 = vld [vmem:[%s5170_s0 + $0x50] sm:$0xff] }
 0xdbc   : > { %v3312_v34 = vsub.f32 %v5515_v59, %v3309_v33  ;;  %v3624_v33 = vld [vmem:[%s5170_s0 + $0x58] sm:$0xff] }
 0xdbe   : > { %v3315_v35 = vmul.f32 %v3312_v34, %v3312_v34 }
 0xdc0   : > { %v3318_v36 = vsel %vm720_vm1, %v3315_v35, 0.0  ;;  %v3625_v35 = vld [vmem:[%s5170_s0 + $0x60] sm:$0xff] }
 0xdc1   : > { %3319 = vadd.xlane.f32.xlu0 %v3318_v36  ;;  %v3626_v36 = vld [vmem:[%s5170_s0 + $0x68] sm:$0xff] }
 0xdc2   : > { %v4822_v37 = vpack.c.bf16 %v3626_v36, %v3625_v35 }
 0xded   : > { %v3308_v41 = vpop.xlane.xlu0 %3307 }
 0xdee   : > { %v3311_v42 = vmul.f32 0.03125, %v3308_v41 }
 0xdf0   : > { %v3314_v43 = vsub.f32 %v5519_v57, %v3311_v42 }
 0xdf2   : > { %v3317_v44 = vmul.f32 %v3314_v43, %v3314_v43 }
 0xdf4   : > { %v3324_v45 = vsel %vm720_vm1, %v3317_v44, 0.0 }
 0xdf5   : > { %v3305_v46 = vpop.xlane.xlu1 %3304  ;;  %3325 = vadd.xlane.f32.xlu0 %v3324_v45 }
 0xdf6   : > { %v3310_v47 = vmul.f32 0.03125, %v3305_v46 }
 0xdf8   : > { %v3313_v48 = vsub.f32 %v5523_v54, %v3310_v47 }
 0xdfa   : > { %v3316_v49 = vmul.f32 %v3313_v48, %v3313_v48 }
 0xdfc   : > { %v3321_v50 = vsel %vm720_vm1, %v3316_v49, 0.0 }
 0xdfd   : > { %3322 = vadd.xlane.f32.xlu1 %v3321_v50 }
 0xe4e   : > { %v3320_v51 = vpop.xlane.xlu0 %3319 }
 0xe4f   : > { %v3327_v52 = vmul.f32 0.03125, %v3320_v51 }
 0xe51   : > { %v3330_v53 = vadd.f32 1e-05, %v3327_v52 }
 0xe53   : > { %4964 = vrsqrt.f32 %v3330_v53 }
 0xe5d   : > { %v4965_v55 = vpop.eup %4964 }
 0xe5e   : > { %v3336_v61 = vmul.f32 %v4965_v55, %v3312_v34  ;;  %v4819_v34 = vpack.c.bf16 %v3624_v33, %v3623_v32 }
 0xe60   : > { %v3346_v1 = vmul.f32 %v4245_v58, %v3336_v61 }
 0xe62   : > { %v3356_v2 = vadd.f32 %v4246_v0, %v3346_v1 }
 0xe64   : > { %4609 = vmatmul.mubr.msk.f32.vlgmr.msra.gmra.mrb[34].mxu1 %vm720_vm1, %v3356_v2 }
 0xe65   : > { %4799 = vmatpush3.bf16.msra.mxu1 %v4786_v4  ;;  %4630 = vmatprep.mubr.msk.f32.mxu1 %vm4998_vm2, %v4999_v31  ;;  %v3628_v4 = vld [vmem:[%s5170_s0 + $0x78] sm:$0xff] }
 0xe66   : > { %4800 = vmatprep.subr.bf16.mxu1 %v4997_v27  ;;  %v4825_v38 = vpack.c.bf16 %v3628_v4, %v3627_v60 }
 0xe69   : > { %4802 = vmatpush3.bf16.msra.mxu1 %v4789_v40 }
 0xe6a   : > { %4827 = vmatprep.subr.bf16.mxu1 %v4997_v27 }
 0xe82   : > { %v3326_v56 = vpop.xlane.xlu0 %3325 }
 0xe83   : > { %v3329_v3 = vmul.f32 0.03125, %v3326_v56 }
 0xe85   : > { %v3332_v6 = vadd.f32 1e-05, %v3329_v3 }
 0xe87   : > { %4966 = vrsqrt.f32 %v3332_v6 }
 0xe8a   : > { %v3323_v62 = vpop.xlane.xlu1 %3322 }
 0xe8b   : > { %v3328_v7 = vmul.f32 0.03125, %v3323_v62 }
 0xe8d   : > { %v3331_v9 = vadd.f32 1e-05, %v3328_v7 }
 0xe8f   : > { %4968 = vrsqrt.f32 %v3331_v9 }
 0xe91   : > { %v4967_v10 = vpop.eup %4966 }
 0xe92   : > { %v3338_v11 = vmul.f32 %v4967_v10, %v3314_v43 }
 0xe94   : > { %v3348_v12 = vmul.f32 %v4245_v58, %v3338_v11 }
 0xe96   : > { %v3358_v13 = vadd.f32 %v4246_v0, %v3348_v12 }
 0xe98   : > { %4631 = vmatmul.mubr.msk.f32.vlgmr.msra.gmra.mrb[36].mxu1 %vm720_vm1, %v3358_v13 }
 0xe99   : > { %v4969_v14 = vpop.eup %4968  ;;  %4700 = vmatprep.mubr.msk.f32.mxu1 %vm4998_vm2, %v4999_v31  ;;  %4829 = vmatpush3.bf16.msra.mxu1 %v5564_v19 }
 0xe9a   : > { %v3337_v15 = vmul.f32 %v4969_v14, %v3313_v48  ;;  %4830 = vmatprep.subr.bf16.mxu1 %v4997_v27 }
 0xe9c   : > { %v3347_v16 = vmul.f32 %v4245_v58, %v3337_v15 }
 0xe9d   : > { %4832 = vmatpush3.bf16.msra.mxu1 %v4807_v21 }
 0xe9e   : > { %v3357_v5 = vadd.f32 %v4246_v0, %v3347_v16  ;;  %4833 = vmatprep.subr.bf16.mxu1 %v4997_v27 }
 0xea0   : > { %4620 = vmatmul.mubr.msk.f32.vlgmr.msra.gmra.mrb[26].mxu0 %vm720_vm1, %v3357_v5 }
 0xea1   : > { %4665 = vmatprep.mubr.msk.f32.mxu0 %vm4998_vm2, %v4999_v31  ;;  %4805 = vmatpush3.bf16.msra.mxu0 %v5564_v19 }
 0xea2   : > { %4806 = vmatprep.subr.bf16.mxu0 %v4997_v27  ;;  %4835 = vmatpush3.bf16.msra.mxu1 %v4810_v24 }
 0xea3   : > { %4836 = vmatprep.subr.bf16.mxu1 %v4997_v27 }
 0xea5   : > { %4808 = vmatpush3.bf16.msra.mxu0 %v4807_v21 }
 0xea6   : > { %4809 = vmatprep.subr.bf16.mxu0 %v4997_v27  ;;  %4838 = vmatpush3.bf16.msra.mxu1 %v4813_v26 }
 0xea7   : > { %4839 = vmatprep.subr.bf16.mxu1 %v4997_v27 }
 0xea9   : > { %4811 = vmatpush3.bf16.msra.mxu0 %v4810_v24 }
 0xeaa   : > { %4812 = vmatprep.subr.bf16.mxu0 %v4997_v27  ;;  %4841 = vmatpush3.bf16.msra.mxu1 %v4816_v30 }
 0xeab   : > { %4842 = vmatprep.subr.bf16.mxu1 %v4997_v27 }
 0xead   : > { %4814 = vmatpush3.bf16.msra.mxu0 %v4813_v26 }
 0xeae   : > { %4815 = vmatprep.subr.bf16.mxu0 %v4997_v27  ;;  %4844 = vmatpush3.bf16.msra.mxu1 %v4819_v34 }
 0xeaf   : > { %4845 = vmatprep.subr.bf16.mxu1 %v4997_v27 }
 0xeb1   : > { %4817 = vmatpush3.bf16.msra.mxu0 %v4816_v30 }
 0xeb2   : > { %4818 = vmatprep.subr.bf16.mxu0 %v4997_v27  ;;  %4847 = vmatpush3.bf16.msra.mxu1 %v4822_v37 }
 0xeb3   : > { %4848 = vmatprep.subr.bf16.mxu1 %v4997_v27 }
 0xeb5   : > { %4820 = vmatpush3.bf16.msra.mxu0 %v4819_v34 }
 0xeb6   : > { %4821 = vmatprep.subr.bf16.mxu0 %v4997_v27  ;;  %4850 = vmatpush3.bf16.msra.mxu1 %v4825_v38 }
 0xeb9   : > { %4823 = vmatpush3.bf16.msra.mxu0 %v4822_v37 }
 0xeba   : > { %4824 = vmatprep.subr.bf16.mxu0 %v4997_v27 }
 0xebd   : > { %4826 = vmatpush3.bf16.msra.mxu0 %v4825_v38 }
 0xebe   : > { %4851 = vmatprep.subr.bf16.mxu0 %v4997_v27 }
 0xf37   : > { %v3439_v40 = vpop.f32.mrb[34].mxu1 }
 0xf38   : > { %v3440_v41 = vadd.f32 %v4247_v39, %v3439_v40  ;;  %v4610_v42 = vpop.f32.mrb[35].mxu1 }
 0xf3a   : > { %v4251_v43 = vmul.f32 -1.702, %v3440_v41 }
 0xf3c   : > { %v3595_v44 = vmul.f32 1.442695, %v4251_v43 }
 0xf3e   : > { %4970 = vpow2.f32 %v3595_v44 }
 0xf48   : > { %v4971_v45 = vpop.eup %4970 }
 0xf49   : > { %v3601_v46 = vadd.f32 1.0, %v4971_v45 }
 0xf4b   : > { %4972 = vrcp.f32 %v3601_v46 }
 0xf55   : > { %v4973_v47 = vpop.eup %4972 }
 0xf56   : > { %v3610_v48 = vmul.f32 %v4973_v47, %v3440_v41 }
 0xf58   : > { %4666 = vmatmul.mubr.f32.vlgmr.msra.gmra.mrb[28].mxu0 %v3610_v48 }
 0xf59   : > { %4853 = vmatpush3.bf16.msra.mxu0 %v5564_v19  ;;  %4735 = vmatprep.mubr.msk.f32.mxu0 %vm4998_vm2, %v4999_v31 }
 0xf5a   : > { %4854 = vmatprep.subr.bf16.mxu0 %v4997_v27 }
 0xf5d   : > { %4856 = vmatpush3.bf16.msra.mxu0 %v4807_v21 }
 0xf5e   : > { %4857 = vmatprep.subr.bf16.mxu0 %v4997_v27 }
 0xf61   : > { %4859 = vmatpush3.bf16.msra.mxu0 %v4810_v24 }
 0xf62   : > { %4860 = vmatprep.subr.bf16.mxu0 %v4997_v27 }
 0xf65   : > { %4862 = vmatpush3.bf16.msra.mxu0 %v4813_v26 }
 0xf66   : > { %4863 = vmatprep.subr.bf16.mxu0 %v4997_v27 }
 0xf69   : > { %4865 = vmatpush3.bf16.msra.mxu0 %v4816_v30 }
 0xf6a   : > { %4866 = vmatprep.subr.bf16.mxu0 %v4997_v27 }
 0xf6b   : > { %v3585_v49 = vpop.f32.mrb[36].mxu1 }
 0xf6c   : > { %v3586_v50 = vadd.f32 %v4247_v39, %v3585_v49  ;;  %v4632_v51 = vpop.f32.mrb[37].mxu1 }
 0xf6d   : > { %4868 = vmatpush3.bf16.msra.mxu0 %v4819_v34 }
 0xf6e   : > { %v4253_v52 = vmul.f32 -1.702, %v3586_v50  ;;  %4869 = vmatprep.subr.bf16.mxu0 %v4997_v27 }
 0xf70   : > { %v3599_v31 = vmul.f32 1.442695, %v4253_v52 }
 0xf71   : > { %4871 = vmatpush3.bf16.msra.mxu0 %v4822_v37 }
 0xf72   : > { %4974 = vpow2.f32 %v3599_v31  ;;  %4872 = vmatprep.subr.bf16.mxu0 %v4997_v27  ;;  %v4254_v27 = vld [vmem:[%s705_s1] ss:$0 sm:$0xff]  ;;  %s5713_s1 = sld [smem:[#allocation9_spill]] (!%p4255_p5) }
 0xf73   : > { %v3512_v53 = vpop.f32.mrb[26].mxu0 }
 0xf74   : > { %v3513_v55 = vadd.f32 %v4247_v39, %v3512_v53  ;;  %v4621_v58 = vpop.f32.mrb[27].mxu0 }
 0xf75   : > { %4874 = vmatpush3.bf16.msra.mxu0 %v4825_v38 }
 0xf76   : > { %v4252_v61 = vmul.f32 -1.702, %v3513_v55 }
 0xf78   : > { %v3597_v0 = vmul.f32 1.442695, %v4252_v61 }
 0xf7a   : > { %4976 = vpow2.f32 %v3597_v0 }
 0xf7c   : > { %v4975_v1 = vpop.eup %4974 }
 0xf7d   : > { %v3603_v2 = vadd.f32 1.0, %v4975_v1 }
 0xf7f   : > { %4978 = vrcp.f32 %v3603_v2 }
 0xf84   : > { %v4977_v56 = vpop.eup %4976 }
 0xf85   : > { %v3602_v3 = vadd.f32 1.0, %v4977_v56 }
 0xf87   : > { %4980 = vrcp.f32 %v3602_v3 }
 0xf89   : > { %v4979_v6 = vpop.eup %4978 }
 0xf8a   : > { %v3612_v62 = vmul.f32 %v4979_v6, %v3586_v50 }
 0xf8c   : > { %4736 = vmatmul.mubr.f32.vlgmr.msra.gmra.mrb[30].mxu0 %v3612_v62 }
 0xf91   : > { %v4981_v7 = vpop.eup %4980 }
 0xf92   : > { %v3611_v9 = vmul.f32 %v4981_v7, %v3513_v55  ;;  %v3966_v7 = vld [vmem:[%s5711_s17] sm:$0xff] (!%p4255_p5) }
 0xf94   : > { %4701 = vmatmul.mubr.f32.vlgmr.msra.gmra.mrb[38].mxu1 %v3611_v9  ;;  %v3967_v9 = vld [vmem:[%s5711_s17 + $0x8] sm:$0xff] (!%p4255_p5) }
0x102b   : > { %v3702_v10 = vpop.f32.mrb[28].mxu0 }
0x102c   : > { %v3703_v11 = vadd.f32 %v4254_v27, %v3702_v10  ;;  %v4667_v12 = vpop.f32.mrb[29].mxu0  ;;  %v5015_v10 = vmov (!%p4255_p5), 0.0|0.0  }
0x102d   : > { %4875 = vmatprep.subr.bf16.mxu0 (!%p4255_p5), %v5015_v10  ;;  %v3969_v12 = vld [vmem:[%s5711_s17 + $0x18] sm:$0xff] (!%p4255_p5) }
0x102e   : > { %v3846_v13 = vadd.f32 %v3703_v11, %v5515_v59  ;;  %v3858_v59 = vld [vmem:[%s5710_s19 + $0x10] sm:$0xff] (!%p4255_p5)  ;;  %v4876_v11 = vpack.c.bf16 (!%p4255_p5), %v3967_v9, %v3966_v7 }
0x102f   : > { %3871 = vperm.xlu1 (!%p4255_p5), %4986, %v3858_v59   ;;  %v4256_v59 = vld [vmem:[%s5712_s6] ss:$0 sm:$0xff] (!%p4255_p5) }
0x1030   : > { %3849 = vst.msk [vmem:[#allocation2] sm:$0xff] %vm720_vm1, %v3846_v13  ;;  %4877 = vmatpush3.bf16.msra.mxu0 (!%p4255_p5), %v4876_v11 }
0x1031   : > { %4878 = vmatprep.subr.bf16.mxu0 (!%p4255_p5), %v5015_v10 }
0x105f   : > { %v3842_v14 = vpop.f32.mrb[30].mxu0 }
0x1060   : > { %v3843_v15 = vadd.f32 %v4254_v27, %v3842_v14  ;;  %v4737_v16 = vpop.f32.mrb[31].mxu0 }
0x1062   : > { %v3848_v5 = vadd.f32 %v3843_v15, %v5519_v57  ;;  %v3856_v57 = vld [vmem:[%s5710_s19] sm:$0xff] (!%p4255_p5) }
0x1063   : > { %3861 = vperm.xlu0 (!%p4255_p5), %4985, %v3856_v57  }
0x1064   : > { %3851 = vst.msk [vmem:[#allocation2 + $0x10] sm:$0xff] %vm720_vm1, %v3848_v5 }
0x1066   : > { %3855 = sbr.rel (%p4255_p5) target bundleno = 4886 (0x1316), region = 96 }
0x1067   : > { %v3772_v17 = vpop.f32.mrb[38].mxu1 }
0x1068   : > { %v3773_v18 = vadd.f32 %v4254_v27, %v3772_v17  ;;  %v4702_v19 = vpop.f32.mrb[39].mxu1  ;;  %v3968_v27 = vld [vmem:[%s5711_s17 + $0x10] sm:$0xff] (!%p4255_p5) }
0x1069   : > { %v4879_v14 = vpack.c.bf16 (!%p4255_p5), %v3969_v12, %v3968_v27 }
0x106a   : > { %v3847_v20 = vadd.f32 %v3773_v18, %v5523_v54  ;;  %v3857_v54 = vld [vmem:[%s5710_s19 + $0x8] sm:$0xff] (!%p4255_p5) }
0x106b   : > { %3866 = vperm.xlu0 (!%p4255_p5), %4985, %v3857_v54   ;;  %4880 = vmatpush3.bf16.msra.mxu0 (!%p4255_p5), %v4879_v14 }
0x106c   : > { %3850 = vst.msk [vmem:[#allocation2 + $0x8] sm:$0xff] %vm720_vm1, %v3847_v20 }
0x10ae   : > { %v3872_v21 = vpop.permute.xlu1 %3871 }
0x10af   : > { %v3876_v23 = vmul.f32 %v3872_v21, %v3848_v5 }
0x10b1   : > { %v3891_v25 = vsel %vm720_vm1, %v3876_v23, 0.0  ;;  %v4257_v23 = vld [vmem:[%s5713_s1] ss:$0 sm:$0xff] }
0x10b2   : > { %v3892_v26 = vrot.slane %v3891_v25, 4 }
0x10b4   : > { %v3893_v32 = vadd.f32 %v3892_v26, %v3891_v25 }
0x10b6   : > { %v3894_v35 = vrot.slane %v3893_v32, 2 }
0x10b8   : > { %v3895_v38 = vadd.f32 %v3894_v35, %v3893_v32 }
0x10ba   : > { %v3896_v42 = vrot.slane %v3895_v38, 1 }
0x10bc   : > { %v3897_v46 = vadd.f32 %v3896_v42, %v3895_v38 }
0x10e2   : > { %v3862_v22 = vpop.permute.xlu0 %3861 }
0x10e3   : > { %v3874_v24 = vmul.f32 %v3862_v22, %v3846_v13  ;;  %v5017_v13 = vmov 0.0  }
0x10e4   : > { %4746 = vmatprep.mubr.msk.f32.mxu0 %vm5016_vm10, %v5017_v13 }
0x10e5   : > { %v3877_v63 = vsel %vm720_vm1, %v3874_v24, 0.0 }
0x10e6   : > { %v3878_v28 = vrot.slane %v3877_v63, 4 }
0x10e8   : > { %v3879_v33 = vadd.f32 %v3878_v28, %v3877_v63 }
0x10ea   : > { %v3867_v29 = vpop.permute.xlu0 %3866  ;;  %v3880_v36 = vrot.slane %v3879_v33, 2 }
0x10eb   : > { %v3875_v30 = vmul.f32 %v3867_v29, %v3847_v20 }
0x10ec   : > { %v3881_v60 = vadd.f32 %v3880_v36, %v3879_v33 }
0x10ed   : > { %v3884_v34 = vsel %vm720_vm1, %v3875_v30, 0.0 }
0x10ee   : > { %v3885_v37 = vrot.slane %v3884_v34, 4  ;;  %v3882_v40 = vrot.slane %v3881_v60, 1 }
0x10f0   : > { %v3886_v4 = vadd.f32 %v3885_v37, %v3884_v34  ;;  %v3883_v44 = vadd.f32 %v3882_v40, %v3881_v60 }
0x10f2   : > { %v3887_v39 = vrot.slane %v3886_v4, 2 }
0x10f4   : > { %v3888_v41 = vadd.f32 %v3887_v39, %v3886_v4 }
0x10f6   : > { %v3889_v43 = vrot.slane %v3888_v41, 1 }
0x10f8   : > { %v3890_v45 = vadd.f32 %v3889_v43, %v3888_v41 }
0x10fa   : > { %v3902_v47 = vsel %vm3901_vm7, %v3890_v45, %v3883_v44 }
0x10fb   : > { %v3904_v48 = vsel %vm3903_vm8, %v3897_v46, %v3902_v47 }
0x10fc   : > { %v3907_v49 = vsel %vm3906_vm9, %v3904_v48, 0.0 }
0x10fd   : > { %3908 = vadd.xlane.f32.xlu1 %v3907_v49 }
0x118a   : > { %v3909_v50 = vpop.xlane.xlu1 %3908 }
0x118b   : > { %v3910_v51 = vmul.f32 0.03125, %v3909_v50 }
0x118d   : > { %v3912_v52 = vrot.slane %v3910_v51, 1  ;;  %v3913_v31 = vrot.slane %v3910_v51, 2  ;;  %v3917_v53 = vsub.f32 %v3883_v44, %v3910_v51 }
0x118f   : > { %v3918_v55 = vsub.f32 %v3890_v45, %v3912_v52  ;;  %v3919_v58 = vsub.f32 %v3897_v46, %v3913_v31  ;;  %v3920_v1 = vmul.f32 %v3917_v53, %v3917_v53 }
0x1191   : > { %v3921_v61 = vmul.f32 %v3918_v55, %v3918_v55  ;;  %v3922_v0 = vmul.f32 %v3919_v58, %v3919_v58 }
0x1193   : > { %v3926_v2 = vrot.slane %v3921_v61, 7  ;;  %v3928_v56 = vrot.slane %v3922_v0, 6 }
0x1195   : > { %v3927_v3 = vsel %vm3901_vm7, %v3926_v2, %v3920_v1 }
0x1196   : > { %v3929_v6 = vsel %vm3903_vm8, %v3928_v56, %v3927_v3 }
0x1197   : > { %v3931_v62 = vsel %vm3906_vm9, %v3929_v6, 0.0 }
0x1198   : > { %3932 = vadd.xlane.f32.xlu0 %v3931_v62 }
0x1225   : > { %v3933_v15 = vpop.xlane.xlu0 %3932 }
0x1226   : > { %v3934_v16 = vmul.f32 0.03125, %v3933_v15 }
0x1228   : > { %v3935_v5 = vadd.f32 1e-05, %v3934_v16 }
0x122a   : > { %4987 = vrsqrt.f32 %v3935_v5 }
0x1234   : > { %v4988_v17 = vpop.eup %4987 }
0x1235   : > { %v3938_v18 = vrot.slane %v4988_v17, 1  ;;  %v3939_v19 = vrot.slane %v4988_v17, 2  ;;  %v3943_v20 = vmul.f32 %v4988_v17, %v3917_v53 }
0x1237   : > { %v3944_v57 = vmul.f32 %v3938_v18, %v3918_v55  ;;  %v3945_v8 = vmul.f32 %v3939_v19, %v3919_v58  ;;  %v3953_v54 = vmul.f32 %v4256_v59, %v3943_v20 }
0x1239   : > { %v3954_v21 = vmul.f32 %v4256_v59, %v3944_v57  ;;  %v3955_v22 = vmul.f32 %v4256_v59, %v3945_v8  ;;  %v3963_v63 = vadd.f32 %v4257_v23, %v3953_v54 }
0x123b   : > { %v3964_v24 = vadd.f32 %v4257_v23, %v3954_v21  ;;  %v3965_v25 = vadd.f32 %v4257_v23, %v3955_v22 }
0x123d   : > { %v3973_v26 = vrot.slane %v3964_v24, 7  ;;  %v3975_v28 = vrot.slane %v3965_v25, 6 }
0x123f   : > { %v3974_v29 = vsel %vm3901_vm7, %v3973_v26, %v3963_v63 }
0x1240   : > { %v3976_v30 = vsel %vm3903_vm8, %v3975_v28, %v3974_v29 }
0x1241   : > { %4747 = vmatmul.mubr.msk.f32.vlgmr.msra.gmra.mrb[0].mxu0 %vm720_vm1, %v3976_v30 }
0x1314   : > { %v4045_v32 = vpop.f32.mrb[0].mxu0 }
0x1315   : > { %4049 = vst.msk [vmem:[%s5714_s28] sm:$0x7] %vm3906_vm9, %v4045_v32  ;;  %v4748_v33 = vpop.f32.mrb[1].mxu0 }
0x1316 PF: > { %s5715_s15 = sld [smem:[#allocation3_spill]] }
0x131c   : > { %s27_s24 = sadd.s32 1, %s5715_s15  }
0x131d   : > { %p24_p6 = scmp.ge.s32.totalorder %s27_s24, 5  }
0x131f   :  { %26 = sbr.rel (!%p24_p6) target bundleno = 9 (0x9), region = 155 }

</bundles_post_ra>
